<compile_context>
chip_gen: v6e
topology: v6e:2x2x1
jax: 0.10.0
libtpu: 0.0.40
codegen_flags: <defaults>
</compile_context>

<pallas_src>
import functools
import math

import jax
import jax.numpy as jnp
from jax.experimental import pallas as pl
from jax.experimental.pallas import tpu as pltpu


def _sigmoid(v):
    # tanh form of the logistic: single EUP op + cheap VPU fma (vs exp + divide).
    return 0.5 * (1.0 + jnp.tanh(0.5 * v))


def _coupling_kernel(mask_ref, x_ref,
                     w_start_ref, b_start_ref,
                     w_in_ref, b_in_ref,
                     w_rs_ref, b_rs_ref,
                     w_skip_last_ref, b_skip_last_ref,
                     w_end_t_ref, b_end_t_ref,
                     w_end_s_ref, b_end_s_ref,
                     z_ref, logdet_ref,
                     *, half, hidden, n_layers, kernel_size, dilations,
                     sigmoid_scale, mxu_dtype):
    f32 = jnp.float32
    T = x_ref.shape[-1]
    half_k = (kernel_size - 1) // 2

    mask = mask_ref[0].astype(f32)                 # (1, T)
    x0 = x_ref[0, :half, :].astype(f32)            # (C2, T)
    x1 = x_ref[0, half:, :].astype(f32)            # (C2, T)

    # ---- start 1x1 conv (weight norm already folded into the weight) ----
    h = jnp.dot(w_start_ref[...], x0.astype(mxu_dtype), preferred_element_type=f32)
    h = (h + b_start_ref[...]) * mask              # (H, T) f32

    # (1, T) time index; one validity mask per distinct shift offset (offsets repeat
    # across taps/layers), broadcast over the H sublanes by the select.
    t_row = jax.lax.broadcasted_iota(jnp.int32, (1, T), 1)
    _valid = {}

    def valid_mask(off):
        m = _valid.get(off)
        if m is None:
            m = (t_row < T - off) if off > 0 else (t_row >= -off)
            _valid[off] = m
        return m

    def shift_time(v, off):
        # out[:, t] = v[:, t + off] if 0 <= t + off < T else 0   ("same" conv padding)
        if off == 0:
            return v
        rolled = pltpu.roll(v, shift=(-off) % T, axis=1)   # XLU lane rotate (cheap)
        return jnp.where(valid_mask(off), rolled, 0.0)

    # ---- WaveNet (WN) stack ----
    skip = jnp.zeros((hidden, T), f32)
    for layer in range(n_layers):
        d = dilations[layer]
        # Dilated "same" conv as ONE MXU matmul over the K stacked shifted copies.
        # TODO(synk): for production H (>=128) accumulate K per-tap matmuls instead of
        #             materializing the (K*H, T) concat buffer (v7x 64 MiB VMEM), and
        #             tile T with halos instead of keeping the full (., T) working set.
        h_taps = jnp.concatenate(
            [shift_time(h, (k - half_k) * d) for k in range(kernel_size)], axis=0)
        x_in = jnp.dot(w_in_ref[layer], h_taps.astype(mxu_dtype),
                       preferred_element_type=f32) + b_in_ref[layer]        # (2H, T)
        # TODO(synk): WN conditioning input `g` (cond_layer, c_in_channels>0) not
        #             implemented; dropout is identity at inference / dropout_p=0.
        acts = jnp.tanh(x_in[:hidden, :]) * _sigmoid(x_in[hidden:, :])      # (H, T)
        acts_mx = acts.astype(mxu_dtype)
        if layer < n_layers - 1:
            rs = jnp.dot(w_rs_ref[layer], acts_mx,
                         preferred_element_type=f32) + b_rs_ref[layer]      # (2H, T)
            h = (h + rs[:hidden, :]) * mask
            skip = skip + rs[hidden:, :]
        else:
            # Last layer produces only the skip half -> (H, H) matmul, no wasted work.
            skip = skip + jnp.dot(w_skip_last_ref[...], acts_mx,
                                  preferred_element_type=f32) + b_skip_last_ref[...]

    out_h = (skip * mask).astype(mxu_dtype)        # WN output

    # ---- end 1x1 conv, split into t / s halves on the weight side ----
    t_aff = jnp.dot(w_end_t_ref[...], out_h, preferred_element_type=f32) + b_end_t_ref[...]
    s_aff = jnp.dot(w_end_s_ref[...], out_h, preferred_element_type=f32) + b_end_s_ref[...]
    if sigmoid_scale:
        s_aff = jnp.log(1e-6 + _sigmoid(s_aff + 2.0))

    # ---- affine coupling (forward) + in-kernel channel concat ----
    # TODO(synk): reverse=True inverse pass not implemented (forward only).
    z1 = (t_aff + jnp.exp(s_aff) * x1) * mask
    z_ref[0, :half, :] = x_ref[0, :half, :]        # z0 = x0 passthrough (no XLA concat)
    z_ref[0, half:, :] = z1.astype(z_ref.dtype)

    ld = jnp.sum(s_aff * mask, axis=1, keepdims=True)    # (C2, 1)  lane reduce
    logdet_ref[0] = jnp.sum(ld, axis=0, keepdims=True)   # (1, 1)   sublane reduce


def coupling_block_forward(x, x_mask, params, *, kernel_size, dilation_rate,
                           num_layers, sigmoid_scale=False, mxu_dtype=jnp.bfloat16):
    """Glow-TTS CouplingBlock forward (reverse=False).

    Args:
      x:      (B, C, T) input.
      x_mask: (B, 1, T) mask or None.
      params: dict of effective (weight-norm folded) conv parameters:
        w_start (H, C//2), b_start (H,)
        w_in (L, 2H, H, K), b_in (L, 2H)
        w_res_skip (L, 2H, H), b_res_skip (L, 2H)   [last layer uses only rows H:2H]
        w_end (C, H), b_end (C,)
      mxu_dtype: dtype for matmul operands (bf16 = native MXU dtype on v5e/v6e/v7x);
        accumulation and all elementwise math stay f32.
    Returns:
      z (B, C, T), logdet (B,)
    """
    B, C, T = x.shape
    C2 = C // 2
    H = params["w_start"].shape[0]
    K = kernel_size
    L = num_layers
    dilations = tuple(dilation_rate ** l for l in range(L))
    f32 = jnp.float32

    if x_mask is None:
        x_mask = jnp.ones((B, 1, T), x.dtype)

    # ---- pack parameters into kernel-friendly layouts ----
    w_start = params["w_start"].astype(f32).astype(mxu_dtype)
    b_start = params["b_start"].astype(f32).reshape(H, 1)
    # (L, 2H, H, K) -> (L, 2H, K, H) -> (L, 2H, K*H): the dilated conv becomes one
    # matmul over the K stacked shifted copies of h.
    w_in = jnp.transpose(params["w_in"].astype(f32), (0, 1, 3, 2)).reshape(
        L, 2 * H, K * H).astype(mxu_dtype)
    b_in = params["b_in"].astype(f32).reshape(L, 2 * H, 1)
    # Layers 0..L-2 need residual + skip halves; the last layer gets a separate (H, H)
    # skip-only weight (no zero-padded residual matmul).
    w_rs_full = params["w_res_skip"].astype(f32)
    b_rs_full = params["b_res_skip"].astype(f32)
    if L > 1:
        w_rs = w_rs_full[:L - 1].astype(mxu_dtype)                    # (L-1, 2H, H)
        b_rs = b_rs_full[:L - 1].reshape(L - 1, 2 * H, 1)
    else:  # dummy (unused) operand so the kernel signature stays uniform
        w_rs = jnp.zeros((1, 2 * H, H), mxu_dtype)
        b_rs = jnp.zeros((1, 2 * H, 1), f32)
    w_skip_last = w_rs_full[L - 1, H:].astype(mxu_dtype)              # (H, H)
    b_skip_last = b_rs_full[L - 1, H:].reshape(H, 1)
    w_end = params["w_end"].astype(f32)
    b_end = params["b_end"].astype(f32)
    w_end_t = w_end[:C2].astype(mxu_dtype)
    w_end_s = w_end[C2:].astype(mxu_dtype)
    b_end_t = b_end[:C2].reshape(C2, 1)
    b_end_s = b_end[C2:].reshape(C2, 1)

    kernel = functools.partial(
        _coupling_kernel, half=C2, hidden=H, n_layers=L, kernel_size=K,
        dilations=dilations, sigmoid_scale=sigmoid_scale, mxu_dtype=mxu_dtype)

    def full_spec(a):
        # Grid-invariant operand: whole array every step (Pallas skips re-DMA when the
        # block index does not change).
        # TODO(synk): at production sizes single-buffer these (pl.Buffered(1)) or stage
        #             them once into scratch VMEM to halve weight VMEM footprint.
        return pl.BlockSpec(a.shape, lambda b, _n=a.ndim: (0,) * _n)

    z, logdet = pl.pallas_call(
        kernel,
        out_shape=(
            jax.ShapeDtypeStruct((B, C, T), x.dtype),
            jax.ShapeDtypeStruct((B, 1, 1), jnp.float32),
        ),
        grid_spec=pltpu.PrefetchScalarGridSpec(
            num_scalar_prefetch=0,
            grid=(B,),
            in_specs=[
                pl.BlockSpec((1, 1, T), lambda b: (b, 0, 0)),    # x_mask
                pl.BlockSpec((1, C, T), lambda b: (b, 0, 0)),    # x (split in-kernel)
                full_spec(w_start), full_spec(b_start),
                full_spec(w_in), full_spec(b_in),
                full_spec(w_rs), full_spec(b_rs),
                full_spec(w_skip_last), full_spec(b_skip_last),
                full_spec(w_end_t), full_spec(b_end_t),
                full_spec(w_end_s), full_spec(b_end_s),
            ],
            out_specs=[
                pl.BlockSpec((1, C, T), lambda b: (b, 0, 0)),    # z (x0 copied in-kernel)
                pl.BlockSpec((1, 1, 1), lambda b: (b, 0, 0)),    # logdet
            ],
        ),
        compiler_params=pltpu.CompilerParams(
            dimension_semantics=("parallel",),        # batch shards across TensorCores
            vmem_limit_bytes=48 * 1024 * 1024,        # safe under v7x's 64 MiB physical
        ),
    )(x_mask, x, w_start, b_start, w_in, b_in, w_rs, b_rs,
      w_skip_last, b_skip_last, w_end_t, b_end_t, w_end_s, b_end_s)

    return z, logdet[:, 0, 0]


# ----------------------------- pure-JAX reference ------------------------------------
def reference_coupling_block(x, x_mask, params, *, kernel_size, dilation_rate,
                             num_layers, sigmoid_scale=False, mxu_dtype=jnp.float32):
    """Straightforward XLA implementation; matmul operands cast to `mxu_dtype` so the
    bf16 kernel variant can be checked against a bit-compatible reference."""
    B, C, T = x.shape
    C2 = C // 2
    H = params["w_start"].shape[0]
    K = kernel_size
    half_k = (K - 1) // 2
    hp = jax.lax.Precision.HIGHEST
    f32 = jnp.float32
    if x_mask is None:
        x_mask = jnp.ones((B, 1, T), x.dtype)
    mask = x_mask.astype(f32)
    xf = x.astype(f32)
    x0, x1 = xf[:, :C2], xf[:, C2:]

    def mm(w, v):  # 1x1 conv as matmul; operands in mxu_dtype, f32 accumulate
        return jnp.einsum("oc,bct->bot", w.astype(f32).astype(mxu_dtype),
                          v.astype(mxu_dtype),
                          preferred_element_type=f32, precision=hp)

    h = (mm(params["w_start"], x0)
         + params["b_start"].astype(f32)[None, :, None]) * mask
    skip = jnp.zeros((B, H, T), f32)
    for layer in range(num_layers):
        d = dilation_rate ** layer
        pad = d * half_k
        h_pad = jnp.pad(h, ((0, 0), (0, 0), (pad, pad)))
        x_in = params["b_in"].astype(f32)[layer][None, :, None]
        for k in range(K):
            x_in = x_in + mm(params["w_in"][layer, :, :, k],
                             h_pad[:, :, k * d:k * d + T])
        acts = jnp.tanh(x_in[:, :H]) * jax.nn.sigmoid(x_in[:, H:])
        if layer < num_layers - 1:
            rs = mm(params["w_res_skip"][layer], acts) \
                + params["b_res_skip"].astype(f32)[layer][None, :, None]
            h = (h + rs[:, :H]) * mask
            skip = skip + rs[:, H:]
        else:
            skip = skip + mm(params["w_res_skip"][layer, H:], acts) \
                + params["b_res_skip"].astype(f32)[layer, H:][None, :, None]
    out_h = skip * mask
    t = mm(params["w_end"][:C2], out_h) + params["b_end"].astype(f32)[:C2][None, :, None]
    s = mm(params["w_end"][C2:], out_h) + params["b_end"].astype(f32)[C2:][None, :, None]
    if sigmoid_scale:
        s = jnp.log(1e-6 + jax.nn.sigmoid(s + 2.0))
    z1 = (t + jnp.exp(s) * x1) * mask
    z = jnp.concatenate([x0, z1], axis=1).astype(x.dtype)
    logdet = jnp.sum(s * mask, axis=(1, 2))
    return z, logdet


if __name__ == "__main__":
    key = jax.random.PRNGKey(0)
    B, C, T = 2, 4, 256          # T multiple of 128 -> lane-dense tiles/stores
    H = 32                       # hidden_channels
    K = 3                        # kernel_size
    dilation_rate = 2
    L = 4                        # num_layers
    C2 = C // 2

    ks = jax.random.split(key, 10)
    x = jax.random.normal(ks[0], (B, C, T), dtype=jnp.float32)
    lengths = jnp.array([T, 200])
    x_mask = (jnp.arange(T)[None, None, :] < lengths[:, None, None]).astype(jnp.float32)

    # Effective (weight-norm folded) conv parameters. NOTE: the PyTorch module
    # zero-initialises the `end` conv; small random values are used here so the whole
    # coupling path is actually exercised by the correctness check.
    params = {
        "w_start": jax.random.normal(ks[1], (H, C2), jnp.float32) / math.sqrt(C2),
        "b_start": 0.1 * jax.random.normal(ks[2], (H,), jnp.float32),
        "w_in": jax.random.normal(ks[3], (L, 2 * H, H, K), jnp.float32) / math.sqrt(H * K),
        "b_in": 0.1 * jax.random.normal(ks[4], (L, 2 * H), jnp.float32),
        "w_res_skip": jax.random.normal(ks[5], (L, 2 * H, H), jnp.float32) / math.sqrt(H),
        "b_res_skip": 0.1 * jax.random.normal(ks[6], (L, 2 * H), jnp.float32),
        "w_end": 0.1 * jax.random.normal(ks[7], (C, H), jnp.float32) / math.sqrt(H),
        "b_end": 0.01 * jax.random.normal(ks[8], (C,), jnp.float32),
    }

    # (mxu_dtype, sigmoid_scale, atol, rtol). The f32 runs are checked tightly; the
    # bf16 run is checked against a reference that also uses bf16 matmul operands, so
    # the residual difference is only accumulation-order / double-rounding noise.
    configs = [
        (jnp.float32, False, 2e-3, 2e-3),
        (jnp.float32, True, 2e-3, 2e-3),
        (jnp.bfloat16, False, 3e-2, 3e-2),
    ]
    for mxu_dtype, sig_scale, atol, rtol in configs:
        z, logdet = coupling_block_forward(
            x, x_mask, params, kernel_size=K, dilation_rate=dilation_rate,
            num_layers=L, sigmoid_scale=sig_scale, mxu_dtype=mxu_dtype)
        z = jax.block_until_ready(z)
        logdet = jax.block_until_ready(logdet)

        z_ref, logdet_ref = reference_coupling_block(
            x, x_mask, params, kernel_size=K, dilation_rate=dilation_rate,
            num_layers=L, sigmoid_scale=sig_scale, mxu_dtype=mxu_dtype)

        tag = f"(mxu_dtype={mxu_dtype.__name__}, sigmoid_scale={sig_scale})"
        assert z.shape == (B, C, T) and logdet.shape == (B,), f"bad shapes {tag}"
        assert jnp.allclose(z, z_ref, atol=atol, rtol=rtol), f"z mismatch {tag}"
        assert jnp.allclose(logdet, logdet_ref, atol=atol, rtol=rtol), f"logdet mismatch {tag}"

    print("KERNEL_OK")
</pallas_src>

<mosaic_0001>
module attributes {stable_mosaic.version = 11 : i64} {
  func.func @_coupling_kernel(%arg0: i32, %arg1: memref<1x1x256xf32, #tpu.memory_space<vmem>>, %arg2: memref<1x4x256xf32, #tpu.memory_space<vmem>>, %arg3: memref<32x2xf32, #tpu.memory_space<vmem>>, %arg4: memref<32x1xf32, #tpu.memory_space<vmem>>, %arg5: memref<4x64x96xf32, #tpu.memory_space<vmem>>, %arg6: memref<4x64x1xf32, #tpu.memory_space<vmem>>, %arg7: memref<3x64x32xf32, #tpu.memory_space<vmem>>, %arg8: memref<3x64x1xf32, #tpu.memory_space<vmem>>, %arg9: memref<32x32xf32, #tpu.memory_space<vmem>>, %arg10: memref<32x1xf32, #tpu.memory_space<vmem>>, %arg11: memref<2x32xf32, #tpu.memory_space<vmem>>, %arg12: memref<2x1xf32, #tpu.memory_space<vmem>>, %arg13: memref<2x32xf32, #tpu.memory_space<vmem>>, %arg14: memref<2x1xf32, #tpu.memory_space<vmem>>, %arg15: memref<1x4x256xf32, #tpu.memory_space<vmem>>, %arg16: memref<1x1x1xf32, #tpu.memory_space<vmem>>) attributes {dimension_semantics = [#tpu.dimension_semantics<parallel>], iteration_bounds = array<i64: 2>, scalar_prefetch = 0 : i64, scratch_operands = 0 : i64, tpu.core_type = #tpu.core_type<tc>, window_params = [{transform_indices = @transform_0, window_bounds = array<i64: 1, 1, 256>}, {transform_indices = @transform_1, window_bounds = array<i64: 1, 4, 256>}, {pipeline_mode = #tpu.pipeline_mode<synchronous>, transform_indices = @transform_2, window_bounds = array<i64: 32, 2>}, {pipeline_mode = #tpu.pipeline_mode<synchronous>, transform_indices = @transform_3, window_bounds = array<i64: 32, 1>}, {pipeline_mode = #tpu.pipeline_mode<synchronous>, transform_indices = @transform_4, window_bounds = array<i64: 4, 64, 96>}, {pipeline_mode = #tpu.pipeline_mode<synchronous>, transform_indices = @transform_5, window_bounds = array<i64: 4, 64, 1>}, {pipeline_mode = #tpu.pipeline_mode<synchronous>, transform_indices = @transform_6, window_bounds = array<i64: 3, 64, 32>}, {pipeline_mode = #tpu.pipeline_mode<synchronous>, transform_indices = @transform_7, window_bounds = array<i64: 3, 64, 1>}, {pipeline_mode = #tpu.pipeline_mode<synchronous>, transform_indices = @transform_8, window_bounds = array<i64: 32, 32>}, {pipeline_mode = #tpu.pipeline_mode<synchronous>, transform_indices = @transform_9, window_bounds = array<i64: 32, 1>}, {pipeline_mode = #tpu.pipeline_mode<synchronous>, transform_indices = @transform_10, window_bounds = array<i64: 2, 32>}, {pipeline_mode = #tpu.pipeline_mode<synchronous>, transform_indices = @transform_11, window_bounds = array<i64: 2, 1>}, {pipeline_mode = #tpu.pipeline_mode<synchronous>, transform_indices = @transform_12, window_bounds = array<i64: 2, 32>}, {pipeline_mode = #tpu.pipeline_mode<synchronous>, transform_indices = @transform_13, window_bounds = array<i64: 2, 1>}, {transform_indices = @transform_14, window_bounds = array<i64: 1, 4, 256>}, {transform_indices = @transform_15, window_bounds = array<i64: 1, 1, 1>}]} {
    %c0 = arith.constant 0 : index
    %c0_0 = arith.constant 0 : index
    %c0_1 = arith.constant 0 : index
    %0 = vector.load %arg1[%c0, %c0_0, %c0_1] : memref<1x1x256xf32, #tpu.memory_space<vmem>>, vector<1x1x256xf32>
    %1 = vector.shape_cast %0 : vector<1x1x256xf32> to vector<1x256xf32>
    %c0_2 = arith.constant 0 : index
    %c0_3 = arith.constant 0 : index
    %c0_4 = arith.constant 0 : index
    %2 = vector.load %arg2[%c0_2, %c0_3, %c0_4] : memref<1x4x256xf32, #tpu.memory_space<vmem>>, vector<1x2x256xf32>
    %3 = vector.shape_cast %2 : vector<1x2x256xf32> to vector<2x256xf32>
    %c0_5 = arith.constant 0 : index
    %c2 = arith.constant 2 : index
    %c0_6 = arith.constant 0 : index
    %4 = vector.load %arg2[%c0_5, %c2, %c0_6] : memref<1x4x256xf32, #tpu.memory_space<vmem>>, vector<1x2x256xf32>
    %5 = vector.shape_cast %4 : vector<1x2x256xf32> to vector<2x256xf32>
    %c0_7 = arith.constant 0 : index
    %c0_8 = arith.constant 0 : index
    %6 = vector.load %arg3[%c0_7, %c0_8] : memref<32x2xf32, #tpu.memory_space<vmem>>, vector<32x2xf32>
    %cst = arith.constant dense<0.000000e+00> : vector<32x256xf32>
    %7 = tpu.matmul %6, %3, %cst {dimension_numbers = #tpu.dot_dimension_numbers<[1], [0], [0], [1], [0, 0, 1, 1], [], []>} : vector<32x2xf32>, vector<2x256xf32>, vector<32x256xf32> -> vector<32x256xf32>
    %c0_9 = arith.constant 0 : index
    %c0_10 = arith.constant 0 : index
    %8 = vector.load %arg4[%c0_9, %c0_10] : memref<32x1xf32, #tpu.memory_space<vmem>>, vector<32x1xf32>
    %9 = vector.broadcast %8 : vector<32x1xf32> to vector<32x256xf32>
    %10 = arith.addf %7, %9 : vector<32x256xf32>
    %11 = vector.broadcast %1 : vector<1x256xf32> to vector<32x256xf32>
    %12 = arith.mulf %10, %11 : vector<32x256xf32>
    %13 = tpu.iota {dimensions = array<i32: 1>} : vector<1x256xi32>
    %cst_11 = arith.constant 0.000000e+00 : f32
    %14 = vector.broadcast %cst_11 : f32 to vector<32x256xf32>
    %c1_i32 = arith.constant 1 : i32
    %15 = tpu.dynamic_rotate %12 by %c1_i32 dim 1 : vector<32x256xf32>, i32 -> vector<32x256xf32>
    %c1_i32_12 = arith.constant 1 : i32
    %16 = vector.broadcast %c1_i32_12 : i32 to vector<1x256xi32>
    %17 = arith.cmpi sge, %13, %16 : vector<1x256xi32>
    %cst_13 = arith.constant 0.000000e+00 : f32
    %18 = vector.shape_cast %17 : vector<1x256xi1> to vector<1x256xi1>
    %19 = vector.broadcast %18 : vector<1x256xi1> to vector<32x256xi1>
    %20 = vector.broadcast %cst_13 : f32 to vector<32x256xf32>
    %21 = arith.select %19, %15, %20 : vector<32x256xi1>, vector<32x256xf32>
    %c255_i32 = arith.constant 255 : i32
    %22 = tpu.dynamic_rotate %12 by %c255_i32 dim 1 : vector<32x256xf32>, i32 -> vector<32x256xf32>
    %c255_i32_14 = arith.constant 255 : i32
    %23 = vector.broadcast %c255_i32_14 : i32 to vector<1x256xi32>
    %24 = arith.cmpi slt, %13, %23 : vector<1x256xi32>
    %cst_15 = arith.constant 0.000000e+00 : f32
    %25 = vector.shape_cast %24 : vector<1x256xi1> to vector<1x256xi1>
    %26 = vector.broadcast %25 : vector<1x256xi1> to vector<32x256xi1>
    %27 = vector.broadcast %cst_15 : f32 to vector<32x256xf32>
    %28 = arith.select %26, %22, %27 : vector<32x256xi1>, vector<32x256xf32>
    %29 = tpu.concatenate %21, %12, %28 in 0 : vector<32x256xf32>, vector<32x256xf32>, vector<32x256xf32> -> vector<96x256xf32>
    %c0_16 = arith.constant 0 : index
    %c0_17 = arith.constant 0 : index
    %c0_18 = arith.constant 0 : index
    %30 = vector.load %arg5[%c0_16, %c0_17, %c0_18] : memref<4x64x96xf32, #tpu.memory_space<vmem>>, vector<1x64x96xf32>
    %31 = vector.shape_cast %30 : vector<1x64x96xf32> to vector<64x96xf32>
    %cst_19 = arith.constant dense<0.000000e+00> : vector<64x256xf32>
    %32 = tpu.matmul %31, %29, %cst_19 {dimension_numbers = #tpu.dot_dimension_numbers<[1], [0], [0], [1], [0, 0, 1, 1], [], []>} : vector<64x96xf32>, vector<96x256xf32>, vector<64x256xf32> -> vector<64x256xf32>
    %c0_20 = arith.constant 0 : index
    %c0_21 = arith.constant 0 : index
    %c0_22 = arith.constant 0 : index
    %33 = vector.load %arg6[%c0_20, %c0_21, %c0_22] : memref<4x64x1xf32, #tpu.memory_space<vmem>>, vector<1x64x1xf32>
    %34 = vector.shape_cast %33 : vector<1x64x1xf32> to vector<64x1xf32>
    %35 = vector.broadcast %34 : vector<64x1xf32> to vector<64x256xf32>
    %36 = arith.addf %32, %35 : vector<64x256xf32>
    %37 = vector.extract_strided_slice %36 {offsets = [0, 0], sizes = [32, 256], strides = [1, 1]} : vector<64x256xf32> to vector<32x256xf32>
    %38 = math.tanh %37 : vector<32x256xf32>
    %39 = vector.extract_strided_slice %36 {offsets = [32, 0], sizes = [32, 256], strides = [1, 1]} : vector<64x256xf32> to vector<32x256xf32>
    %cst_23 = arith.constant 5.000000e-01 : f32
    %40 = vector.broadcast %cst_23 : f32 to vector<32x256xf32>
    %41 = arith.mulf %40, %39 : vector<32x256xf32>
    %42 = math.tanh %41 : vector<32x256xf32>
    %cst_24 = arith.constant 1.000000e+00 : f32
    %43 = vector.broadcast %cst_24 : f32 to vector<32x256xf32>
    %44 = arith.addf %43, %42 : vector<32x256xf32>
    %cst_25 = arith.constant 5.000000e-01 : f32
    %45 = vector.broadcast %cst_25 : f32 to vector<32x256xf32>
    %46 = arith.mulf %45, %44 : vector<32x256xf32>
    %47 = arith.mulf %38, %46 : vector<32x256xf32>
    %c0_26 = arith.constant 0 : index
    %c0_27 = arith.constant 0 : index
    %c0_28 = arith.constant 0 : index
    %48 = vector.load %arg7[%c0_26, %c0_27, %c0_28] : memref<3x64x32xf32, #tpu.memory_space<vmem>>, vector<1x64x32xf32>
    %49 = vector.shape_cast %48 : vector<1x64x32xf32> to vector<64x32xf32>
    %cst_29 = arith.constant dense<0.000000e+00> : vector<64x256xf32>
    %50 = tpu.matmul %49, %47, %cst_29 {dimension_numbers = #tpu.dot_dimension_numbers<[1], [0], [0], [1], [0, 0, 1, 1], [], []>} : vector<64x32xf32>, vector<32x256xf32>, vector<64x256xf32> -> vector<64x256xf32>
    %c0_30 = arith.constant 0 : index
    %c0_31 = arith.constant 0 : index
    %c0_32 = arith.constant 0 : index
    %51 = vector.load %arg8[%c0_30, %c0_31, %c0_32] : memref<3x64x1xf32, #tpu.memory_space<vmem>>, vector<1x64x1xf32>
    %52 = vector.shape_cast %51 : vector<1x64x1xf32> to vector<64x1xf32>
    %53 = vector.broadcast %52 : vector<64x1xf32> to vector<64x256xf32>
    %54 = arith.addf %50, %53 : vector<64x256xf32>
    %55 = vector.extract_strided_slice %54 {offsets = [0, 0], sizes = [32, 256], strides = [1, 1]} : vector<64x256xf32> to vector<32x256xf32>
    %56 = arith.addf %12, %55 : vector<32x256xf32>
    %57 = vector.broadcast %1 : vector<1x256xf32> to vector<32x256xf32>
    %58 = arith.mulf %56, %57 : vector<32x256xf32>
    %59 = vector.extract_strided_slice %54 {offsets = [32, 0], sizes = [32, 256], strides = [1, 1]} : vector<64x256xf32> to vector<32x256xf32>
    %60 = arith.addf %14, %59 : vector<32x256xf32>
    %c2_i32 = arith.constant 2 : i32
    %61 = tpu.dynamic_rotate %58 by %c2_i32 dim 1 : vector<32x256xf32>, i32 -> vector<32x256xf32>
    %c2_i32_33 = arith.constant 2 : i32
    %62 = vector.broadcast %c2_i32_33 : i32 to vector<1x256xi32>
    %63 = arith.cmpi sge, %13, %62 : vector<1x256xi32>
    %cst_34 = arith.constant 0.000000e+00 : f32
    %64 = vector.shape_cast %63 : vector<1x256xi1> to vector<1x256xi1>
    %65 = vector.broadcast %64 : vector<1x256xi1> to vector<32x256xi1>
    %66 = vector.broadcast %cst_34 : f32 to vector<32x256xf32>
    %67 = arith.select %65, %61, %66 : vector<32x256xi1>, vector<32x256xf32>
    %c254_i32 = arith.constant 254 : i32
    %68 = tpu.dynamic_rotate %58 by %c254_i32 dim 1 : vector<32x256xf32>, i32 -> vector<32x256xf32>
    %c254_i32_35 = arith.constant 254 : i32
    %69 = vector.broadcast %c254_i32_35 : i32 to vector<1x256xi32>
    %70 = arith.cmpi slt, %13, %69 : vector<1x256xi32>
    %cst_36 = arith.constant 0.000000e+00 : f32
    %71 = vector.shape_cast %70 : vector<1x256xi1> to vector<1x256xi1>
    %72 = vector.broadcast %71 : vector<1x256xi1> to vector<32x256xi1>
    %73 = vector.broadcast %cst_36 : f32 to vector<32x256xf32>
    %74 = arith.select %72, %68, %73 : vector<32x256xi1>, vector<32x256xf32>
    %75 = tpu.concatenate %67, %58, %74 in 0 : vector<32x256xf32>, vector<32x256xf32>, vector<32x256xf32> -> vector<96x256xf32>
    %c1 = arith.constant 1 : index
    %c0_37 = arith.constant 0 : index
    %c0_38 = arith.constant 0 : index
    %76 = vector.load %arg5[%c1, %c0_37, %c0_38] : memref<4x64x96xf32, #tpu.memory_space<vmem>>, vector<1x64x96xf32>
    %77 = vector.shape_cast %76 : vector<1x64x96xf32> to vector<64x96xf32>
    %cst_39 = arith.constant dense<0.000000e+00> : vector<64x256xf32>
    %78 = tpu.matmul %77, %75, %cst_39 {dimension_numbers = #tpu.dot_dimension_numbers<[1], [0], [0], [1], [0, 0, 1, 1], [], []>} : vector<64x96xf32>, vector<96x256xf32>, vector<64x256xf32> -> vector<64x256xf32>
    %c1_40 = arith.constant 1 : index
    %c0_41 = arith.constant 0 : index
    %c0_42 = arith.constant 0 : index
    %79 = vector.load %arg6[%c1_40, %c0_41, %c0_42] : memref<4x64x1xf32, #tpu.memory_space<vmem>>, vector<1x64x1xf32>
    %80 = vector.shape_cast %79 : vector<1x64x1xf32> to vector<64x1xf32>
    %81 = vector.broadcast %80 : vector<64x1xf32> to vector<64x256xf32>
    %82 = arith.addf %78, %81 : vector<64x256xf32>
    %83 = vector.extract_strided_slice %82 {offsets = [0, 0], sizes = [32, 256], strides = [1, 1]} : vector<64x256xf32> to vector<32x256xf32>
    %84 = math.tanh %83 : vector<32x256xf32>
    %85 = vector.extract_strided_slice %82 {offsets = [32, 0], sizes = [32, 256], strides = [1, 1]} : vector<64x256xf32> to vector<32x256xf32>
    %cst_43 = arith.constant 5.000000e-01 : f32
    %86 = vector.broadcast %cst_43 : f32 to vector<32x256xf32>
    %87 = arith.mulf %86, %85 : vector<32x256xf32>
    %88 = math.tanh %87 : vector<32x256xf32>
    %cst_44 = arith.constant 1.000000e+00 : f32
    %89 = vector.broadcast %cst_44 : f32 to vector<32x256xf32>
    %90 = arith.addf %89, %88 : vector<32x256xf32>
    %cst_45 = arith.constant 5.000000e-01 : f32
    %91 = vector.broadcast %cst_45 : f32 to vector<32x256xf32>
    %92 = arith.mulf %91, %90 : vector<32x256xf32>
    %93 = arith.mulf %84, %92 : vector<32x256xf32>
    %c1_46 = arith.constant 1 : index
    %c0_47 = arith.constant 0 : index
    %c0_48 = arith.constant 0 : index
    %94 = vector.load %arg7[%c1_46, %c0_47, %c0_48] : memref<3x64x32xf32, #tpu.memory_space<vmem>>, vector<1x64x32xf32>
    %95 = vector.shape_cast %94 : vector<1x64x32xf32> to vector<64x32xf32>
    %cst_49 = arith.constant dense<0.000000e+00> : vector<64x256xf32>
    %96 = tpu.matmul %95, %93, %cst_49 {dimension_numbers = #tpu.dot_dimension_numbers<[1], [0], [0], [1], [0, 0, 1, 1], [], []>} : vector<64x32xf32>, vector<32x256xf32>, vector<64x256xf32> -> vector<64x256xf32>
    %c1_50 = arith.constant 1 : index
    %c0_51 = arith.constant 0 : index
    %c0_52 = arith.constant 0 : index
    %97 = vector.load %arg8[%c1_50, %c0_51, %c0_52] : memref<3x64x1xf32, #tpu.memory_space<vmem>>, vector<1x64x1xf32>
    %98 = vector.shape_cast %97 : vector<1x64x1xf32> to vector<64x1xf32>
    %99 = vector.broadcast %98 : vector<64x1xf32> to vector<64x256xf32>
    %100 = arith.addf %96, %99 : vector<64x256xf32>
    %101 = vector.extract_strided_slice %100 {offsets = [0, 0], sizes = [32, 256], strides = [1, 1]} : vector<64x256xf32> to vector<32x256xf32>
    %102 = arith.addf %58, %101 : vector<32x256xf32>
    %103 = vector.broadcast %1 : vector<1x256xf32> to vector<32x256xf32>
    %104 = arith.mulf %102, %103 : vector<32x256xf32>
    %105 = vector.extract_strided_slice %100 {offsets = [32, 0], sizes = [32, 256], strides = [1, 1]} : vector<64x256xf32> to vector<32x256xf32>
    %106 = arith.addf %60, %105 : vector<32x256xf32>
    %c4_i32 = arith.constant 4 : i32
    %107 = tpu.dynamic_rotate %104 by %c4_i32 dim 1 : vector<32x256xf32>, i32 -> vector<32x256xf32>
    %c4_i32_53 = arith.constant 4 : i32
    %108 = vector.broadcast %c4_i32_53 : i32 to vector<1x256xi32>
    %109 = arith.cmpi sge, %13, %108 : vector<1x256xi32>
    %cst_54 = arith.constant 0.000000e+00 : f32
    %110 = vector.shape_cast %109 : vector<1x256xi1> to vector<1x256xi1>
    %111 = vector.broadcast %110 : vector<1x256xi1> to vector<32x256xi1>
    %112 = vector.broadcast %cst_54 : f32 to vector<32x256xf32>
    %113 = arith.select %111, %107, %112 : vector<32x256xi1>, vector<32x256xf32>
    %c252_i32 = arith.constant 252 : i32
    %114 = tpu.dynamic_rotate %104 by %c252_i32 dim 1 : vector<32x256xf32>, i32 -> vector<32x256xf32>
    %c252_i32_55 = arith.constant 252 : i32
    %115 = vector.broadcast %c252_i32_55 : i32 to vector<1x256xi32>
    %116 = arith.cmpi slt, %13, %115 : vector<1x256xi32>
    %cst_56 = arith.constant 0.000000e+00 : f32
    %117 = vector.shape_cast %116 : vector<1x256xi1> to vector<1x256xi1>
    %118 = vector.broadcast %117 : vector<1x256xi1> to vector<32x256xi1>
    %119 = vector.broadcast %cst_56 : f32 to vector<32x256xf32>
    %120 = arith.select %118, %114, %119 : vector<32x256xi1>, vector<32x256xf32>
    %121 = tpu.concatenate %113, %104, %120 in 0 : vector<32x256xf32>, vector<32x256xf32>, vector<32x256xf32> -> vector<96x256xf32>
    %c2_57 = arith.constant 2 : index
    %c0_58 = arith.constant 0 : index
    %c0_59 = arith.constant 0 : index
    %122 = vector.load %arg5[%c2_57, %c0_58, %c0_59] : memref<4x64x96xf32, #tpu.memory_space<vmem>>, vector<1x64x96xf32>
    %123 = vector.shape_cast %122 : vector<1x64x96xf32> to vector<64x96xf32>
    %cst_60 = arith.constant dense<0.000000e+00> : vector<64x256xf32>
    %124 = tpu.matmul %123, %121, %cst_60 {dimension_numbers = #tpu.dot_dimension_numbers<[1], [0], [0], [1], [0, 0, 1, 1], [], []>} : vector<64x96xf32>, vector<96x256xf32>, vector<64x256xf32> -> vector<64x256xf32>
    %c2_61 = arith.constant 2 : index
    %c0_62 = arith.constant 0 : index
    %c0_63 = arith.constant 0 : index
    %125 = vector.load %arg6[%c2_61, %c0_62, %c0_63] : memref<4x64x1xf32, #tpu.memory_space<vmem>>, vector<1x64x1xf32>
    %126 = vector.shape_cast %125 : vector<1x64x1xf32> to vector<64x1xf32>
    %127 = vector.broadcast %126 : vector<64x1xf32> to vector<64x256xf32>
    %128 = arith.addf %124, %127 : vector<64x256xf32>
    %129 = vector.extract_strided_slice %128 {offsets = [0, 0], sizes = [32, 256], strides = [1, 1]} : vector<64x256xf32> to vector<32x256xf32>
    %130 = math.tanh %129 : vector<32x256xf32>
    %131 = vector.extract_strided_slice %128 {offsets = [32, 0], sizes = [32, 256], strides = [1, 1]} : vector<64x256xf32> to vector<32x256xf32>
    %cst_64 = arith.constant 5.000000e-01 : f32
    %132 = vector.broadcast %cst_64 : f32 to vector<32x256xf32>
    %133 = arith.mulf %132, %131 : vector<32x256xf32>
    %134 = math.tanh %133 : vector<32x256xf32>
    %cst_65 = arith.constant 1.000000e+00 : f32
    %135 = vector.broadcast %cst_65 : f32 to vector<32x256xf32>
    %136 = arith.addf %135, %134 : vector<32x256xf32>
    %cst_66 = arith.constant 5.000000e-01 : f32
    %137 = vector.broadcast %cst_66 : f32 to vector<32x256xf32>
    %138 = arith.mulf %137, %136 : vector<32x256xf32>
    %139 = arith.mulf %130, %138 : vector<32x256xf32>
    %c2_67 = arith.constant 2 : index
    %c0_68 = arith.constant 0 : index
    %c0_69 = arith.constant 0 : index
    %140 = vector.load %arg7[%c2_67, %c0_68, %c0_69] : memref<3x64x32xf32, #tpu.memory_space<vmem>>, vector<1x64x32xf32>
    %141 = vector.shape_cast %140 : vector<1x64x32xf32> to vector<64x32xf32>
    %cst_70 = arith.constant dense<0.000000e+00> : vector<64x256xf32>
    %142 = tpu.matmul %141, %139, %cst_70 {dimension_numbers = #tpu.dot_dimension_numbers<[1], [0], [0], [1], [0, 0, 1, 1], [], []>} : vector<64x32xf32>, vector<32x256xf32>, vector<64x256xf32> -> vector<64x256xf32>
    %c2_71 = arith.constant 2 : index
    %c0_72 = arith.constant 0 : index
    %c0_73 = arith.constant 0 : index
    %143 = vector.load %arg8[%c2_71, %c0_72, %c0_73] : memref<3x64x1xf32, #tpu.memory_space<vmem>>, vector<1x64x1xf32>
    %144 = vector.shape_cast %143 : vector<1x64x1xf32> to vector<64x1xf32>
    %145 = vector.broadcast %144 : vector<64x1xf32> to vector<64x256xf32>
    %146 = arith.addf %142, %145 : vector<64x256xf32>
    %147 = vector.extract_strided_slice %146 {offsets = [0, 0], sizes = [32, 256], strides = [1, 1]} : vector<64x256xf32> to vector<32x256xf32>
    %148 = arith.addf %104, %147 : vector<32x256xf32>
    %149 = vector.broadcast %1 : vector<1x256xf32> to vector<32x256xf32>
    %150 = arith.mulf %148, %149 : vector<32x256xf32>
    %151 = vector.extract_strided_slice %146 {offsets = [32, 0], sizes = [32, 256], strides = [1, 1]} : vector<64x256xf32> to vector<32x256xf32>
    %152 = arith.addf %106, %151 : vector<32x256xf32>
    %c8_i32 = arith.constant 8 : i32
    %153 = tpu.dynamic_rotate %150 by %c8_i32 dim 1 : vector<32x256xf32>, i32 -> vector<32x256xf32>
    %c8_i32_74 = arith.constant 8 : i32
    %154 = vector.broadcast %c8_i32_74 : i32 to vector<1x256xi32>
    %155 = arith.cmpi sge, %13, %154 : vector<1x256xi32>
    %cst_75 = arith.constant 0.000000e+00 : f32
    %156 = vector.shape_cast %155 : vector<1x256xi1> to vector<1x256xi1>
    %157 = vector.broadcast %156 : vector<1x256xi1> to vector<32x256xi1>
    %158 = vector.broadcast %cst_75 : f32 to vector<32x256xf32>
    %159 = arith.select %157, %153, %158 : vector<32x256xi1>, vector<32x256xf32>
    %c248_i32 = arith.constant 248 : i32
    %160 = tpu.dynamic_rotate %150 by %c248_i32 dim 1 : vector<32x256xf32>, i32 -> vector<32x256xf32>
    %c248_i32_76 = arith.constant 248 : i32
    %161 = vector.broadcast %c248_i32_76 : i32 to vector<1x256xi32>
    %162 = arith.cmpi slt, %13, %161 : vector<1x256xi32>
    %cst_77 = arith.constant 0.000000e+00 : f32
    %163 = vector.shape_cast %162 : vector<1x256xi1> to vector<1x256xi1>
    %164 = vector.broadcast %163 : vector<1x256xi1> to vector<32x256xi1>
    %165 = vector.broadcast %cst_77 : f32 to vector<32x256xf32>
    %166 = arith.select %164, %160, %165 : vector<32x256xi1>, vector<32x256xf32>
    %167 = tpu.concatenate %159, %150, %166 in 0 : vector<32x256xf32>, vector<32x256xf32>, vector<32x256xf32> -> vector<96x256xf32>
    %c3 = arith.constant 3 : index
    %c0_78 = arith.constant 0 : index
    %c0_79 = arith.constant 0 : index
    %168 = vector.load %arg5[%c3, %c0_78, %c0_79] : memref<4x64x96xf32, #tpu.memory_space<vmem>>, vector<1x64x96xf32>
    %169 = vector.shape_cast %168 : vector<1x64x96xf32> to vector<64x96xf32>
    %cst_80 = arith.constant dense<0.000000e+00> : vector<64x256xf32>
    %170 = tpu.matmul %169, %167, %cst_80 {dimension_numbers = #tpu.dot_dimension_numbers<[1], [0], [0], [1], [0, 0, 1, 1], [], []>} : vector<64x96xf32>, vector<96x256xf32>, vector<64x256xf32> -> vector<64x256xf32>
    %c3_81 = arith.constant 3 : index
    %c0_82 = arith.constant 0 : index
    %c0_83 = arith.constant 0 : index
    %171 = vector.load %arg6[%c3_81, %c0_82, %c0_83] : memref<4x64x1xf32, #tpu.memory_space<vmem>>, vector<1x64x1xf32>
    %172 = vector.shape_cast %171 : vector<1x64x1xf32> to vector<64x1xf32>
    %173 = vector.broadcast %172 : vector<64x1xf32> to vector<64x256xf32>
    %174 = arith.addf %170, %173 : vector<64x256xf32>
    %175 = vector.extract_strided_slice %174 {offsets = [0, 0], sizes = [32, 256], strides = [1, 1]} : vector<64x256xf32> to vector<32x256xf32>
    %176 = math.tanh %175 : vector<32x256xf32>
    %177 = vector.extract_strided_slice %174 {offsets = [32, 0], sizes = [32, 256], strides = [1, 1]} : vector<64x256xf32> to vector<32x256xf32>
    %cst_84 = arith.constant 5.000000e-01 : f32
    %178 = vector.broadcast %cst_84 : f32 to vector<32x256xf32>
    %179 = arith.mulf %178, %177 : vector<32x256xf32>
    %180 = math.tanh %179 : vector<32x256xf32>
    %cst_85 = arith.constant 1.000000e+00 : f32
    %181 = vector.broadcast %cst_85 : f32 to vector<32x256xf32>
    %182 = arith.addf %181, %180 : vector<32x256xf32>
    %cst_86 = arith.constant 5.000000e-01 : f32
    %183 = vector.broadcast %cst_86 : f32 to vector<32x256xf32>
    %184 = arith.mulf %183, %182 : vector<32x256xf32>
    %185 = arith.mulf %176, %184 : vector<32x256xf32>
    %c0_87 = arith.constant 0 : index
    %c0_88 = arith.constant 0 : index
    %186 = vector.load %arg9[%c0_87, %c0_88] : memref<32x32xf32, #tpu.memory_space<vmem>>, vector<32x32xf32>
    %cst_89 = arith.constant dense<0.000000e+00> : vector<32x256xf32>
    %187 = tpu.matmul %186, %185, %cst_89 {dimension_numbers = #tpu.dot_dimension_numbers<[1], [0], [0], [1], [0, 0, 1, 1], [], []>} : vector<32x32xf32>, vector<32x256xf32>, vector<32x256xf32> -> vector<32x256xf32>
    %188 = arith.addf %152, %187 : vector<32x256xf32>
    %c0_90 = arith.constant 0 : index
    %c0_91 = arith.constant 0 : index
    %189 = vector.load %arg10[%c0_90, %c0_91] : memref<32x1xf32, #tpu.memory_space<vmem>>, vector<32x1xf32>
    %190 = vector.broadcast %189 : vector<32x1xf32> to vector<32x256xf32>
    %191 = arith.addf %188, %190 : vector<32x256xf32>
    %192 = vector.broadcast %1 : vector<1x256xf32> to vector<32x256xf32>
    %193 = arith.mulf %191, %192 : vector<32x256xf32>
    %c0_92 = arith.constant 0 : index
    %c0_93 = arith.constant 0 : index
    %194 = vector.load %arg11[%c0_92, %c0_93] : memref<2x32xf32, #tpu.memory_space<vmem>>, vector<2x32xf32>
    %cst_94 = arith.constant dense<0.000000e+00> : vector<2x256xf32>
    %195 = tpu.matmul %194, %193, %cst_94 {dimension_numbers = #tpu.dot_dimension_numbers<[1], [0], [0], [1], [0, 0, 1, 1], [], []>} : vector<2x32xf32>, vector<32x256xf32>, vector<2x256xf32> -> vector<2x256xf32>
    %c0_95 = arith.constant 0 : index
    %c0_96 = arith.constant 0 : index
    %196 = vector.load %arg12[%c0_95, %c0_96] : memref<2x1xf32, #tpu.memory_space<vmem>>, vector<2x1xf32>
    %197 = vector.broadcast %196 : vector<2x1xf32> to vector<2x256xf32>
    %198 = arith.addf %195, %197 : vector<2x256xf32>
    %c0_97 = arith.constant 0 : index
    %c0_98 = arith.constant 0 : index
    %199 = vector.load %arg13[%c0_97, %c0_98] : memref<2x32xf32, #tpu.memory_space<vmem>>, vector<2x32xf32>
    %cst_99 = arith.constant dense<0.000000e+00> : vector<2x256xf32>
    %200 = tpu.matmul %199, %193, %cst_99 {dimension_numbers = #tpu.dot_dimension_numbers<[1], [0], [0], [1], [0, 0, 1, 1], [], []>} : vector<2x32xf32>, vector<32x256xf32>, vector<2x256xf32> -> vector<2x256xf32>
    %c0_100 = arith.constant 0 : index
    %c0_101 = arith.constant 0 : index
    %201 = vector.load %arg14[%c0_100, %c0_101] : memref<2x1xf32, #tpu.memory_space<vmem>>, vector<2x1xf32>
    %202 = vector.broadcast %201 : vector<2x1xf32> to vector<2x256xf32>
    %203 = arith.addf %200, %202 : vector<2x256xf32>
    %204 = math.exp %203 : vector<2x256xf32>
    %205 = arith.mulf %204, %5 : vector<2x256xf32>
    %206 = arith.addf %198, %205 : vector<2x256xf32>
    %207 = vector.broadcast %1 : vector<1x256xf32> to vector<2x256xf32>
    %208 = arith.mulf %206, %207 : vector<2x256xf32>
    %c0_102 = arith.constant 0 : index
    %c0_103 = arith.constant 0 : index
    %c0_104 = arith.constant 0 : index
    %209 = vector.load %arg2[%c0_102, %c0_103, %c0_104] : memref<1x4x256xf32, #tpu.memory_space<vmem>>, vector<1x2x256xf32>
    %210 = vector.shape_cast %209 : vector<1x2x256xf32> to vector<2x256xf32>
    %c0_105 = arith.constant 0 : index
    %c0_106 = arith.constant 0 : index
    %c0_107 = arith.constant 0 : index
    %211 = vector.load %arg15[%c0_105, %c0_106, %c0_107] : memref<1x4x256xf32, #tpu.memory_space<vmem>>, vector<1x2x256xf32>
    %212 = vector.shape_cast %211 : vector<1x2x256xf32> to vector<2x256xf32>
    %213 = vector.shape_cast %210 : vector<2x256xf32> to vector<1x2x256xf32>
    tpu.vector_store %arg15[%c0_105, %c0_106, %c0_107], %213 {strides = array<i32>} : memref<1x4x256xf32, #tpu.memory_space<vmem>>, vector<1x2x256xf32>,
    %c0_108 = arith.constant 0 : index
    %c2_109 = arith.constant 2 : index
    %c0_110 = arith.constant 0 : index
    %214 = vector.load %arg15[%c0_108, %c2_109, %c0_110] : memref<1x4x256xf32, #tpu.memory_space<vmem>>, vector<1x2x256xf32>
    %215 = vector.shape_cast %214 : vector<1x2x256xf32> to vector<2x256xf32>
    %216 = vector.shape_cast %208 : vector<2x256xf32> to vector<1x2x256xf32>
    tpu.vector_store %arg15[%c0_108, %c2_109, %c0_110], %216 {strides = array<i32>} : memref<1x4x256xf32, #tpu.memory_space<vmem>>, vector<1x2x256xf32>,
    %217 = vector.broadcast %1 : vector<1x256xf32> to vector<2x256xf32>
    %218 = arith.mulf %203, %217 : vector<2x256xf32>
    %cst_111 = arith.constant dense<0.000000e+00> : vector<2xf32>
    %219 = vector.multi_reduction <add>, %218, %cst_111 [1] : vector<2x256xf32> to vector<2xf32>
    %220 = vector.shape_cast %219 : vector<2xf32> to vector<2x1xf32>
    %cst_112 = arith.constant dense<0.000000e+00> : vector<1xf32>
    %221 = vector.multi_reduction <add>, %220, %cst_112 [0] : vector<2x1xf32> to vector<1xf32>
    %222 = vector.shape_cast %221 : vector<1xf32> to vector<1x1xf32>
    %c0_113 = arith.constant 0 : index
    %c0_114 = arith.constant 0 : index
    %c0_115 = arith.constant 0 : index
    %223 = vector.load %arg16[%c0_113, %c0_114, %c0_115] : memref<1x1x1xf32, #tpu.memory_space<vmem>>, vector<1x1x1xf32>
    %224 = vector.shape_cast %223 : vector<1x1x1xf32> to vector<1x1xf32>
    %225 = vector.shape_cast %222 : vector<1x1xf32> to vector<1x1x1xf32>
    tpu.vector_store %arg16[%c0_113, %c0_114, %c0_115], %225 {strides = array<i32>} : memref<1x1x1xf32, #tpu.memory_space<vmem>>, vector<1x1x1xf32>,
    return
  }
  func.func @transform_0(%arg0: i32) -> (i32, i32, i32) {
    %c0_i32 = arith.constant 0 : i32
    %c0_i32_0 = arith.constant 0 : i32
    %c0_i32_1 = arith.constant 0 : i32
    return %arg0, %c0_i32, %c0_i32_0 : i32, i32, i32
  }
  func.func @transform_1(%arg0: i32) -> (i32, i32, i32) {
    %c0_i32 = arith.constant 0 : i32
    %c0_i32_0 = arith.constant 0 : i32
    %c0_i32_1 = arith.constant 0 : i32
    return %arg0, %c0_i32, %c0_i32_0 : i32, i32, i32
  }
  func.func @transform_2(%arg0: i32) -> (i32, i32) {
    %c0_i32 = arith.constant 0 : i32
    %c0_i32_0 = arith.constant 0 : i32
    %c0_i32_1 = arith.constant 0 : i32
    return %c0_i32, %c0_i32_0 : i32, i32
  }
  func.func @transform_3(%arg0: i32) -> (i32, i32) {
    %c0_i32 = arith.constant 0 : i32
    %c0_i32_0 = arith.constant 0 : i32
    %c0_i32_1 = arith.constant 0 : i32
    return %c0_i32, %c0_i32_0 : i32, i32
  }
  func.func @transform_4(%arg0: i32) -> (i32, i32, i32) {
    %c0_i32 = arith.constant 0 : i32
    %c0_i32_0 = arith.constant 0 : i32
    %c0_i32_1 = arith.constant 0 : i32
    %c0_i32_2 = arith.constant 0 : i32
    return %c0_i32, %c0_i32_0, %c0_i32_1 : i32, i32, i32
  }
  func.func @transform_5(%arg0: i32) -> (i32, i32, i32) {
    %c0_i32 = arith.constant 0 : i32
    %c0_i32_0 = arith.constant 0 : i32
    %c0_i32_1 = arith.constant 0 : i32
    %c0_i32_2 = arith.constant 0 : i32
    return %c0_i32, %c0_i32_0, %c0_i32_1 : i32, i32, i32
  }
  func.func @transform_6(%arg0: i32) -> (i32, i32, i32) {
    %c0_i32 = arith.constant 0 : i32
    %c0_i32_0 = arith.constant 0 : i32
    %c0_i32_1 = arith.constant 0 : i32
    %c0_i32_2 = arith.constant 0 : i32
    return %c0_i32, %c0_i32_0, %c0_i32_1 : i32, i32, i32
  }
  func.func @transform_7(%arg0: i32) -> (i32, i32, i32) {
    %c0_i32 = arith.constant 0 : i32
    %c0_i32_0 = arith.constant 0 : i32
    %c0_i32_1 = arith.constant 0 : i32
    %c0_i32_2 = arith.constant 0 : i32
    return %c0_i32, %c0_i32_0, %c0_i32_1 : i32, i32, i32
  }
  func.func @transform_8(%arg0: i32) -> (i32, i32) {
    %c0_i32 = arith.constant 0 : i32
    %c0_i32_0 = arith.constant 0 : i32
    %c0_i32_1 = arith.constant 0 : i32
    return %c0_i32, %c0_i32_0 : i32, i32
  }
  func.func @transform_9(%arg0: i32) -> (i32, i32) {
    %c0_i32 = arith.constant 0 : i32
    %c0_i32_0 = arith.constant 0 : i32
    %c0_i32_1 = arith.constant 0 : i32
    return %c0_i32, %c0_i32_0 : i32, i32
  }
  func.func @transform_10(%arg0: i32) -> (i32, i32) {
    %c0_i32 = arith.constant 0 : i32
    %c0_i32_0 = arith.constant 0 : i32
    %c0_i32_1 = arith.constant 0 : i32
    return %c0_i32, %c0_i32_0 : i32, i32
  }
  func.func @transform_11(%arg0: i32) -> (i32, i32) {
    %c0_i32 = arith.constant 0 : i32
    %c0_i32_0 = arith.constant 0 : i32
    %c0_i32_1 = arith.constant 0 : i32
    return %c0_i32, %c0_i32_0 : i32, i32
  }
  func.func @transform_12(%arg0: i32) -> (i32, i32) {
    %c0_i32 = arith.constant 0 : i32
    %c0_i32_0 = arith.constant 0 : i32
    %c0_i32_1 = arith.constant 0 : i32
    return %c0_i32, %c0_i32_0 : i32, i32
  }
  func.func @transform_13(%arg0: i32) -> (i32, i32) {
    %c0_i32 = arith.constant 0 : i32
    %c0_i32_0 = arith.constant 0 : i32
    %c0_i32_1 = arith.constant 0 : i32
    return %c0_i32, %c0_i32_0 : i32, i32
  }
  func.func @transform_14(%arg0: i32) -> (i32, i32, i32) {
    %c0_i32 = arith.constant 0 : i32
    %c0_i32_0 = arith.constant 0 : i32
    %c0_i32_1 = arith.constant 0 : i32
    return %arg0, %c0_i32, %c0_i32_0 : i32, i32, i32
  }
  func.func @transform_15(%arg0: i32) -> (i32, i32, i32) {
    %c0_i32 = arith.constant 0 : i32
    %c0_i32_0 = arith.constant 0 : i32
    %c0_i32_1 = arith.constant 0 : i32
    return %arg0, %c0_i32, %c0_i32_0 : i32, i32, i32
  }
}

</mosaic_0001>

<bundles_post_ra>
// kernel: tpu_custom_call.1
= control target key start
LH: loop header
LB: loop body
LE: loop exit
PB: predicated region body
PF: predicated region fallthrough
CT: control target
= control target key end

     0   :  { %s4770_s0 = inlined_call_operand.vmem [shape: f32[2,1,256], index: 0, kind: input, shape index: {}]   ;;  %s4771_s1 = inlined_call_operand.vmem [shape: f32[2,4,256], index: 1, kind: input, shape index: {}]   ;;  %s4772_s2 = inlined_call_operand.vmem [shape: f32[32,2], index: 2, kind: input, shape index: {}]   ;;  %s4773_s3 = inlined_call_operand.vmem [shape: f32[32,1], index: 3, kind: input, shape index: {}]   ;;  %s4774_s4 = inlined_call_operand.vmem [shape: f32[4,64,96], index: 4, kind: input, shape index: {}]   ;;  %s4775_s5 = inlined_call_operand.vmem [shape: f32[4,64,1], index: 5, kind: input, shape index: {}]   ;;  %s4776_s6 = inlined_call_operand.vmem [shape: f32[3,64,32], index: 6, kind: input, shape index: {}]   ;;  %s4777_s7 = inlined_call_operand.vmem [shape: f32[3,64,1], index: 7, kind: input, shape index: {}]   ;;  %s4778_s8 = inlined_call_operand.vmem [shape: f32[32,32], index: 8, kind: input, shape index: {}]   ;;  %s4779_s9 = inlined_call_operand.vmem [shape: f32[32,1], index: 9, kind: input, shape index: {}]   ;;  %s4780_s10 = inlined_call_operand.vmem [shape: f32[2,32], index: 10, kind: input, shape index: {}]   ;;  %s4781_s11 = inlined_call_operand.vmem [shape: f32[2,1], index: 11, kind: input, shape index: {}]   ;;  %s4782_s12 = inlined_call_operand.vmem [shape: f32[2,32], index: 12, kind: input, shape index: {}]   ;;  %s4783_s13 = inlined_call_operand.vmem [shape: f32[2,1], index: 13, kind: input, shape index: {}]   ;;  %s4784_s14 = inlined_call_operand.hbm [shape: f32[2,4,256], index: 14, kind: output, shape index: {0}]   ;;  %s4785_s15 = inlined_call_operand.vmem [shape: f32[2,1,1], index: 15, kind: output, shape index: {1}]  }
   0x1   :  { %4791 = sst [smem:[#allocation10_spill]] %s4770_s0 }
   0x2   :  { %4792 = sst [smem:[#allocation11_spill]] %s4771_s1 }
   0x3   :  { %21 = vsyncpa [#allocation3], 0 }
   0x4   :  { %23 = vsyncpa [#allocation3 + $0x1], 0  ;;  %s3618_s18 = smov 0   ;;  %s3620_s19 = smov 0  }
   0x5   :  { %s3622_s20 = smov 0   ;;  %s3624_s21 = smov 0  }
   0x6 LB: > { %4793 = sst [smem:[#allocation5_spill]] %s3513_s18  ;;  %s3639_s22 = sadd.s32 4294967295, %s3525_s21   ;;  %s3525_s21 = sphi %s3624_s21, %s4804_s21   ;;  %s3521_s20 = sphi %s3622_s20, %s4806_s20   ;;  %s3517_s19 = sphi %s3620_s19, %s4808_s19   ;;  %s3513_s18 = sphi %s3618_s18, %s4807_s18  }
   0x7   : > { %4794 = sst [smem:[#allocation6_spill]] %s3521_s20  ;;  %s3085_s23 = sadd.s32 4294967294, %s3525_s21  }
   0x8   : > { %s3643_s24 = sadd.s32 1, %s3525_s21   ;;  %s340_s25 = sadd.s32 1, %s3521_s20 }
   0x9   : > { %4795 = sst [smem:[#allocation7_spill]] %s3643_s24  ;;  %s337_s26 = ssub.s32 %s3525_s21, %s3643_s24 }
   0xa   : > { %p350_p0 = scmp.ne.s32.totalorder %s3521_s20, %s3517_s19  ;;  %p338_p1 = scmp.eq.s32.totalorder %s337_s26, 0 }
   0xb   : > { %p351_p2 = scmp.eq.s32.totalorder %s3639_s22, 1  ;;  %p356_p3 = scmp.ne.s32.totalorder %s3517_s19, %s3513_s18 }
   0xc   : > { %p357_p4 = scmp.eq.s32.totalorder %s3085_s23, 1  ;;  %p3088_p7 = scmp.ge.s32.totalorder %s3525_s21, 1 }
   0xd   : > { %s3654_s27 = scalar_select %p338_p1, %s3521_s20, %s340_s25  }
   0xe   : > { %p3656_p5 = por %p351_p2, %p350_p0  ;;  %p3660_p6 = por %p357_p4, %p356_p3 }
   0xf   : > { %4796 = sst [smem:[#allocation8_spill]] %s3654_s27  ;;  %p452_p8 = scmp.lt.s32.totalorder %s3525_s21, 3 }
  0x10   : > { %s4798_s29 = scalar_select %p3660_p6, 1, 0 }
  0x11   : > { %p453_p9 = pnand %p3088_p7, %p452_p8 }
  0x12   : > { %4799 = sst [smem:[#allocation9_spill]] %s4798_s29  ;;  %p507_p10 = scmp.lt.s32.totalorder (!%p453_p9), %s3639_s22, 1 }
  0x13   : > { %456 = sbr.rel (%p453_p9) target bundleno = 3055 (0xbef), region = 76  ;;  %s4800_s1 = sld [smem:[#allocation11_spill]] (!%p453_p9) }
  0x14   : > { %s4801_s0 = sld [smem:[#allocation10_spill]] (!%p453_p9)  ;;  %s3529_s27 = smov (!%p453_p9), 127  }
  0x15   : > { %s3530_s29 = smov (!%p453_p9), 1   ;;  %s3535_s30 = smov (!%p453_p9), 120  }
  0x16   : > { %s3537_s23 = smov (!%p453_p9), [#allocation2]  }
  0x18   : > { %v3527_v0 = vmov 0.0   ;;  %v527_v1 = vld [vmem:[%s4773_s3 + $0x8] sm:$0xff]  ;;  %s3673_s17 = scalar_select %p507_p10, %s3639_s22, 1  ;;  %v3528_v2 = vmov 0   ;;  %v529_v3 = vld [vmem:[%s4773_s3 + $0x18] sm:$0xff]  ;;  %v526_v4 = vld [vmem:[%s4773_s3] sm:$0xff]  ;;  %v660_v12 = vlaneseq }
  0x19   : > { %634 = vmatprep.mubr.f32.mxu0 %v3527_v0  ;;  %904 = vmatprep.mubr.f32.mxu1 %v3527_v0  ;;  %v528_v5 = vld [vmem:[%s4773_s3 + $0x10] sm:$0xff]  ;;  %vm565_vm0 = vcmask 1041408   ;;  %v522_v8 = vld [vmem:[%s4772_s2] sm:$0xff]  ;;  %vm552_vm1 = vcmask 15360   ;;  %v523_v9 = vld [vmem:[%s4772_s2 + $0x8] sm:$0xff]  ;;  %vm815_vm6 = vcmask 785408  }
  0x1a   : > { %3330 = vset.pattern.permute.xlu1 %v3528_v2  ;;  %3329 = vset.pattern.permute.xlu0 %v3528_v2  ;;  %s3278_s26 = sshll.u32 %s3673_s17, 3  ;;  %v524_v10 = vld [vmem:[%s4772_s2 + $0x10] sm:$0xff]  ;;  %v525_v11 = vld [vmem:[%s4772_s2 + $0x18] sm:$0xff]  ;;  %s3090_s16 = sshll.u32 %s3673_s17, 1  ;;  %v661_v14 = vshrl.u32 %v660_v12, 7  ;;  %v772_v49 = vld [vmem:[%s4775_s5 + $0x28] sm:$0xff] }
  0x1b   : > { %537 = vperm.xlu1 %3330, %v527_v1   ;;  %547 = vperm.xlu0 %3329, %v529_v3   ;;  %s3685_s24 = scalar_lea.vmem %s4800_s1, %s3278_s26  ;;  %s510_s18 = scalar_lea.vmem %s4801_s0, %s3090_s16  ;;  %v774_v47 = vld [vmem:[%s4775_s5 + $0x38] sm:$0xff]  ;;  %v773_v48 = vld [vmem:[%s4775_s5 + $0x30] sm:$0xff]  ;;  %v771_v51 = vld [vmem:[%s4775_s5 + $0x20] sm:$0xff]  ;;  %v3800_v59 = vand.u32 127, %v660_v12  ;;  %vm1057_vm7 = vcmask 261120  }
  0x1c   : > { %v3691_v6 = vld [vmem:[%s3685_s24] sm:$0x33]  ;;  %v662_v18 = vsub.s32 0, %v661_v14  ;;  %v666_v21 = vsub.s32 1, %v661_v14  ;;  %v770_v50 = vld [vmem:[%s4775_s5 + $0x18] sm:$0xff]  ;;  %v769_v52 = vld [vmem:[%s4775_s5 + $0x10] sm:$0xff] }
  0x1d   : > { %v551_v7 = vcombine.high %v3691_v6, %v3691_v6  ;;  %v519_v19 = vld [vmem:[%s510_s18] sm:$0x3]  ;;  %v768_v53 = vld [vmem:[%s4775_s5 + $0x8] sm:$0xff]  ;;  %v1012_v55 = vld [vmem:[%s4777_s7 + $0x18] sm:$0xff]  ;;  %v3803_v61 = vadd.s32 128, %v3800_v59  ;;  %vm736_vm3 = vcmp.lt.s32.totalorder %v3800_v59, 127 }
  0x1e   : > { %v3719_v24 = vrot.slane %v519_v19, %v662_v18  ;;  %v3721_v28 = vrot.slane %v519_v19, %v666_v21  ;;  %v767_v54 = vld [vmem:[%s4775_s5] sm:$0xff]  ;;  %v1011_v56 = vld [vmem:[%s4777_s7 + $0x10] sm:$0xff]  ;;  %v1010_v57 = vld [vmem:[%s4777_s7 + $0x8] sm:$0xff]  ;;  %vm697_vm4 = vcmp.lt.s32.totalorder %v3800_v59, 1  ;;  %vm706_vm5 = vcmp.ge.s32.totalorder %v3800_v59, 1  ;;  %s3531_s0 = smov 126  }
  0x1f   : > { %532 = vperm.xlu1 %3330, %v526_v4   ;;  %542 = vperm.xlu0 %3329, %v528_v5   ;;  %v1009_v58 = vld [vmem:[%s4777_s7] sm:$0xff]  ;;  %vm746_vm2 = vcmp.lt.s32.totalorder %v3803_v61, 255  ;;  %vm1284_vm8 = vcmp.lt.s32.totalorder %v3803_v61, 254  ;;  %vm1274_vm9 = vcmp.lt.s32.totalorder %v3800_v59, 126  ;;  %vm1235_vm10 = vcmp.lt.s32.totalorder %v3800_v59, 2  ;;  %s3533_s18 = smov 124  }
  0x20   : > { %3093 = vmatprep.subr.msk.mxu0 %vm565_vm0, %v551_v7  ;;  %vm1244_vm11 = vcmp.ge.s32.totalorder %v3800_v59, 2  ;;  %vm1824_vm12 = vcmp.lt.s32.totalorder %v3803_v61, 252  ;;  %vm1814_vm13 = vcmp.lt.s32.totalorder %v3800_v59, 124  ;;  %vm1775_vm14 = vcmp.lt.s32.totalorder %v3800_v59, 4  ;;  %s3536_s16 = smov 8  }
  0x21   : > { %3094 = vmatpush1.msk.msra.mxu0 %vm565_vm0, %v3691_v6  ;;  %vm1784_vm15 = vcmp.ge.s32.totalorder %v3800_v59, 4 }
  0x22   : > { %3095 = vmatmul.mubr.msk.f32.vlgmr.msra.gmra.mxu0 %vm552_vm1, %v522_v8 }
  0x23   : > { %640 = vmatprep.mubr.f32.mxu0 %v3527_v0 }
  0x26   : > { %3096 = vmatmul.mubr.msk.f32.gmra.mxu0 %vm552_vm1, %v523_v9 }
  0x27   : > { %646 = vmatprep.mubr.f32.mxu0 %v3527_v0 }
  0x2a   : > { %3097 = vmatmul.mubr.msk.f32.gmra.mxu0 %vm552_vm1, %v524_v10 }
  0x2b   : > { %652 = vmatprep.mubr.f32.mxu0 %v3527_v0 }
  0x2e   : > { %3098 = vmatmul.mubr.msk.f32.gmra.mxu0 %vm552_vm1, %v525_v11  ;;  %vm2364_vm1 = vcmp.lt.s32.totalorder %v3803_v61, 248 }
  0x2f   : > { %1146 = vmatprep.mubr.f32.mxu0 %v3527_v0 }
  0x96   : > { %v548_v15 = vpop.permute.xlu0 %547  ;;  %v538_v26 = vpop.permute.xlu1 %537 }
  0x9a   : > { %v543_v22 = vpop.permute.xlu0 %542  ;;  %v533_v38 = vpop.permute.xlu1 %532 }
  0xe2   : > { %v636_v13 = vpop.f32.mrf.mxu0 }
  0xe3   : > { %v637_v41 = vadd.f32 %v636_v13, %v533_v38 }
  0xe4   : > { %v638_v16 = vpop.f32.mrf.mxu0 }
  0xe5   : > { %v639_v43 = vadd.f32 %v638_v16, %v533_v38  ;;  %v3747_v45 = vmul.f32 %v3719_v24, %v637_v41  ;;  %v761_v38 = vld [vmem:[%s4774_s4 + $0x10] sm:$0xff]  ;;  %v763_v41 = vld [vmem:[%s4774_s4 + $0x20] sm:$0xff] }
  0xe6   : > { %v642_v17 = vpop.f32.mrf.mxu0 }
  0xe7   : > { %v643_v35 = vadd.f32 %v642_v17, %v538_v26  ;;  %v3751_v46 = vmul.f32 %v3721_v28, %v639_v43  ;;  %v764_v43 = vld [vmem:[%s4774_s4 + $0x28] sm:$0xff] }
  0xe8   : > { %v644_v20 = vpop.f32.mrf.mxu0 }
  0xe9   : > { %v645_v39 = vadd.f32 %v644_v20, %v538_v26  ;;  %v3739_v42 = vmul.f32 %v3719_v24, %v643_v35  ;;  %v759_v35 = vld [vmem:[%s4774_s4] sm:$0xff] }
  0xea   : > { %v648_v23 = vpop.f32.mrf.mxu0 }
  0xeb   : > { %v649_v25 = vadd.f32 %v648_v23, %v543_v22  ;;  %v3743_v44 = vmul.f32 %v3721_v28, %v645_v39  ;;  %v762_v39 = vld [vmem:[%s4774_s4 + $0x18] sm:$0xff] }
  0xec   : > { %v650_v27 = vpop.f32.mrf.mxu0 }
  0xed   : > { %v3724_v29 = vmul.f32 %v3719_v24, %v649_v25  ;;  %v651_v30 = vadd.f32 %v650_v27, %v543_v22 }
  0xee   : > { %v654_v31 = vpop.f32.mrf.mxu0 }
  0xef   : > { %v3727_v32 = vmul.f32 %v3721_v28, %v651_v30  ;;  %v655_v33 = vadd.f32 %v654_v31, %v548_v15  ;;  %724 = vrot.lane.b32.xlu0 %v3724_v29, %s3529_s27 }
  0xf0   : > { %v656_v34 = vpop.f32.mrf.mxu0 }
  0xf1   : > { %v3731_v36 = vmul.f32 %v3719_v24, %v655_v33  ;;  %v657_v37 = vadd.f32 %v656_v34, %v548_v15  ;;  %732 = vrot.lane.b32.xlu1 %v3727_v32, %s3529_s27 }
  0xf3   : > { %v3735_v40 = vmul.f32 %v3721_v28, %v657_v37  ;;  %726 = vrot.lane.b32.xlu0 %v3731_v36, %s3529_s27  ;;  %v760_v37 = vld [vmem:[%s4774_s4 + $0x8] sm:$0xff] }
  0xf5   : > { %734 = vrot.lane.b32.xlu1 %v3735_v40, %s3529_s27 }
  0xf7   : > { %722 = vrot.lane.b32.xlu0 %v3739_v42, %s3529_s27 }
  0xf9   : > { %730 = vrot.lane.b32.xlu1 %v3743_v44, %s3529_s27 }
  0xfb   : > { %720 = vrot.lane.b32.xlu0 %v3747_v45, %s3529_s27 }
  0xfd   : > { %728 = vrot.lane.b32.xlu1 %v3751_v46, %s3529_s27  ;;  %s3532_s27 = smov 2  }
  0xff   : > { %687 = vrot.lane.b32.xlu0 %v3731_v36, %s3530_s29 }
 0x101   : > { %693 = vrot.lane.b32.xlu1 %v3727_v32, %s3530_s29 }
 0x103   : > { %685 = vrot.lane.b32.xlu0 %v3724_v29, %s3530_s29 }
 0x105   : > { %695 = vrot.lane.b32.xlu1 %v3735_v40, %s3530_s29 }
 0x107   : > { %683 = vrot.lane.b32.xlu0 %v3739_v42, %s3530_s29 }
 0x109   : > { %691 = vrot.lane.b32.xlu1 %v3743_v44, %s3530_s29 }
 0x10b   : > { %681 = vrot.lane.b32.xlu0 %v3747_v45, %s3530_s29 }
 0x10d   : > { %689 = vrot.lane.b32.xlu1 %v3751_v46, %s3530_s29 }
 0x10f   : > { %812 = vperm.xlu0 %3329, %v774_v47   ;;  %v765_v47 = vld [vmem:[%s4774_s4 + $0x30] sm:$0xff] }
 0x111   : > { %807 = vperm.xlu1 %3330, %v773_v48   ;;  %v766_v48 = vld [vmem:[%s4774_s4 + $0x38] sm:$0xff] }
 0x113   : > { %802 = vperm.xlu0 %3329, %v772_v49  }
 0x115   : > { %792 = vperm.xlu1 %3330, %v770_v50  }
 0x117   : > { %797 = vperm.xlu0 %3329, %v771_v51  }
 0x119   : > { %787 = vperm.xlu1 %3330, %v769_v52  }
 0x11b   : > { %782 = vperm.xlu0 %3329, %v768_v53  }
 0x11d   : > { %777 = vperm.xlu1 %3330, %v767_v54  }
 0x11f   : > { %1034 = vperm.xlu0 %3329, %v1012_v55  }
 0x121   : > { %1029 = vperm.xlu1 %3330, %v1011_v56  }
 0x123   : > { %1024 = vperm.xlu0 %3329, %v1010_v57  }
 0x125   : > { %1019 = vperm.xlu1 %3330, %v1009_v58  }
 0x161   : > { %v725_v60 = vpop.permute.xlu0 %724 }
 0x163   : > { %v733_v62 = vpop.permute.xlu1 %732 }
 0x164   : > { %v743_v5 = vsel %vm736_vm3, %v733_v62, %v725_v60  ;;  %v739_v8 = vsel %vm736_vm3, %v725_v60, %v733_v62 }
 0x165   : > { %v727_v63 = vpop.permute.xlu0 %726 }
 0x167   : > { %v735_v1 = vpop.permute.xlu1 %734 }
 0x168   : > { %v744_v2 = vsel %vm736_vm3, %v735_v1, %v727_v63  ;;  %v740_v3 = vsel %vm736_vm3, %v727_v63, %v735_v1 }
 0x169   : > { %3099 = vmatprep.subr.msk.mxu1 %vm746_vm2, %v744_v2  ;;  %v723_v4 = vpop.permute.xlu0 %722 }
 0x16a   : > { %849 = vmatpush1.msra.mxu1 %v740_v3 }
 0x16b   : > { %v731_v7 = vpop.permute.xlu1 %730  ;;  %3100 = vmatprep.subr.msk.mxu1 %vm746_vm2, %v743_v5 }
 0x16c   : > { %851 = vmatpush1.msra.mxu1 %v739_v8  ;;  %v742_v9 = vsel %vm736_vm3, %v731_v7, %v723_v4  ;;  %v738_v10 = vsel %vm736_vm3, %v723_v4, %v731_v7 }
 0x16d   : > { %3101 = vmatprep.subr.msk.mxu1 %vm746_vm2, %v742_v9  ;;  %v721_v11 = vpop.permute.xlu0 %720 }
 0x16e   : > { %853 = vmatpush1.msra.mxu1 %v738_v10 }
 0x16f   : > { %v729_v12 = vpop.permute.xlu1 %728 }
 0x170   : > { %v741_v13 = vsel %vm736_vm3, %v729_v12, %v721_v11  ;;  %v737_v14 = vsel %vm736_vm3, %v721_v11, %v729_v12  ;;  %vm2315_vm3 = vcmp.lt.s32.totalorder %v3800_v59, 8 }
 0x171   : > { %3102 = vmatprep.subr.msk.mxu1 %vm746_vm2, %v741_v13  ;;  %v688_v15 = vpop.permute.xlu0 %687  ;;  %vm2354_vm2 = vcmp.lt.s32.totalorder %v3800_v59, 120 }
 0x172   : > { %855 = vmatpush1.msra.mxu1 %v737_v14 }
 0x173   : > { %v694_v16 = vpop.permute.xlu1 %693  ;;  %856 = vmatprep.subr.mxu1 %v3735_v40 }
 0x174   : > { %857 = vmatpush1.msra.mxu1 %v3731_v36 }
 0x175   : > { %858 = vmatprep.subr.mxu1 %v3727_v32  ;;  %v686_v17 = vpop.permute.xlu0 %685 }
 0x176   : > { %859 = vmatpush1.msra.mxu1 %v3724_v29  ;;  %v700_v23 = vsel %vm697_vm4, %v686_v17, %v694_v16  ;;  %v704_v25 = vsel %vm697_vm4, %v694_v16, %v686_v17 }
 0x177   : > { %v696_v18 = vpop.permute.xlu1 %695  ;;  %860 = vmatprep.subr.mxu1 %v3743_v44 }
 0x178   : > { %861 = vmatpush1.msra.mxu1 %v3739_v42  ;;  %v701_v20 = vsel %vm697_vm4, %v688_v15, %v696_v18  ;;  %v705_v22 = vsel %vm697_vm4, %v696_v18, %v688_v15 }
 0x179   : > { %862 = vmatprep.subr.mxu1 %v3751_v46  ;;  %v684_v19 = vpop.permute.xlu0 %683 }
 0x17a   : > { %863 = vmatpush1.msra.mxu1 %v3747_v45 }
 0x17b   : > { %v692_v21 = vpop.permute.xlu1 %691  ;;  %864 = vmatprep.subr.mxu1 %v701_v20 }
 0x17c   : > { %3103 = vmatpush1.msk.msra.mxu1 %vm706_vm5, %v705_v22  ;;  %v699_v26 = vsel %vm697_vm4, %v684_v19, %v692_v21  ;;  %v703_v31 = vsel %vm697_vm4, %v692_v21, %v684_v19 }
 0x17d   : > { %866 = vmatprep.subr.mxu1 %v700_v23  ;;  %v682_v27 = vpop.permute.xlu0 %681 }
 0x17e   : > { %3104 = vmatpush1.msk.msra.mxu1 %vm706_vm5, %v704_v25 }
 0x17f   : > { %v690_v30 = vpop.permute.xlu1 %689  ;;  %868 = vmatprep.subr.mxu1 %v699_v26 }
 0x180   : > { %3105 = vmatpush1.msk.msra.mxu1 %vm706_vm5, %v703_v31  ;;  %v698_v33 = vsel %vm697_vm4, %v682_v27, %v690_v30  ;;  %v702_v34 = vsel %vm697_vm4, %v690_v30, %v682_v27  ;;  %vm2324_vm4 = vcmp.ge.s32.totalorder %v3800_v59, 8  ;;  %v3238_v59 = vld [vmem:[%s4774_s4 + $0xd8] sm:$0xff] }
 0x181   : > { %870 = vmatprep.subr.mxu1 %v698_v33 }
 0x182   : > { %3106 = vmatpush1.msk.msra.mxu1 %vm706_vm5, %v702_v34 }
 0x183   : > { %3107 = vmatmul.mubr.msk.f32.vlgmr.msra.gmra.mxu1 %vm815_vm6, %v759_v35 }
 0x184   : > { %910 = vmatprep.mubr.f32.mxu1 %v3527_v0 }
 0x187   : > { %3108 = vmatmul.mubr.msk.f32.gmra.mxu1 %vm815_vm6, %v760_v37 }
 0x188   : > { %916 = vmatprep.mubr.f32.mxu1 %v3527_v0 }
 0x18a   : > { %v813_v53 = vpop.permute.xlu0 %812 }
 0x18b   : > { %3109 = vmatmul.mubr.msk.f32.gmra.mxu1 %vm815_vm6, %v761_v38 }
 0x18c   : > { %922 = vmatprep.mubr.f32.mxu1 %v3527_v0  ;;  %v808_v3 = vpop.permute.xlu1 %807 }
 0x18e   : > { %v803_v57 = vpop.permute.xlu0 %802 }
 0x18f   : > { %3110 = vmatmul.mubr.msk.f32.gmra.mxu1 %vm815_vm6, %v762_v39 }
 0x190   : > { %928 = vmatprep.mubr.f32.mxu1 %v3527_v0  ;;  %v793_v14 = vpop.permute.xlu1 %792 }
 0x192   : > { %v798_v63 = vpop.permute.xlu0 %797 }
 0x193   : > { %3111 = vmatmul.mubr.msk.f32.gmra.mxu1 %vm815_vm6, %v763_v41 }
 0x194   : > { %934 = vmatprep.mubr.f32.mxu1 %v3527_v0  ;;  %v788_v27 = vpop.permute.xlu1 %787 }
 0x196   : > { %v783_v34 = vpop.permute.xlu0 %782 }
 0x197   : > { %3112 = vmatmul.mubr.msk.f32.gmra.mxu1 %vm815_vm6, %v764_v43 }
 0x198   : > { %940 = vmatprep.mubr.f32.mxu1 %v3527_v0  ;;  %v778_v38 = vpop.permute.xlu1 %777 }
 0x19b   : > { %3113 = vmatmul.mubr.msk.f32.gmra.mxu1 %vm815_vm6, %v765_v47 }
 0x19c   : > { %946 = vmatprep.mubr.f32.mxu1 %v3527_v0 }
 0x19f   : > { %3114 = vmatmul.mubr.msk.f32.gmra.mxu1 %vm815_vm6, %v766_v48 }
 0x1a0   : > { %1686 = vmatprep.mubr.f32.mxu1 %v3527_v0 }
 0x243   : > { %v906_v49 = vpop.f32.mrf.mxu1 }
 0x244   : > { %v907_v47 = vadd.f32 %v906_v49, %v778_v38 }
 0x245   : > { %v908_v50 = vpop.f32.mrf.mxu1 }
 0x246   : > { %v909_v41 = vadd.f32 %v908_v50, %v778_v38 }
 0x247   : > { %v912_v51 = vpop.f32.mrf.mxu1 }
 0x248   : > { %v913_v39 = vadd.f32 %v912_v51, %v783_v34 }
 0x249   : > { %v914_v52 = vpop.f32.mrf.mxu1 }
 0x24a   : > { %v915_v37 = vadd.f32 %v914_v52, %v783_v34  ;;  %v1004_v34 = vld [vmem:[%s4776_s6 + $0x18] sm:$0xff] }
 0x24b   : > { %v918_v54 = vpop.f32.mrf.mxu1 }
 0x24c   : > { %v919_v35 = vadd.f32 %v918_v54, %v788_v27 }
 0x24d   : > { %v920_v55 = vpop.f32.mrf.mxu1 }
 0x24e   : > { %v921_v33 = vadd.f32 %v920_v55, %v788_v27 }
 0x24f   : > { %v924_v56 = vpop.f32.mrf.mxu1 }
 0x250   : > { %v925_v31 = vadd.f32 %v924_v56, %v793_v14 }
 0x251   : > { %v926_v58 = vpop.f32.mrf.mxu1 }
 0x252   : > { %v927_v30 = vadd.f32 %v926_v58, %v793_v14 }
 0x253   : > { %v930_v60 = vpop.f32.mrf.mxu1 }
 0x254   : > { %v931_v15 = vadd.f32 %v930_v60, %v798_v63 }
 0x255   : > { %v932_v62 = vpop.f32.mrf.mxu1 }
 0x256   : > { %v933_v2 = vadd.f32 %v932_v62, %v798_v63  ;;  %v961_v25 = vmul.f32 0.5, %v931_v15 }
 0x257   : > { %v936_v1 = vpop.f32.mrf.mxu1 }
 0x258   : > { %v962_v8 = vmul.f32 0.5, %v933_v2  ;;  %v937_v10 = vadd.f32 %v936_v1, %v803_v57 }
 0x259   : > { %v938_v4 = vpop.f32.mrf.mxu1 }
 0x25a   : > { %v939_v5 = vadd.f32 %v938_v4, %v803_v57  ;;  %3333 = vtanh.f32 %v962_v8  ;;  %v963_v20 = vmul.f32 0.5, %v937_v10 }
 0x25b   : > { %v942_v7 = vpop.f32.mrf.mxu1 }
 0x25c   : > { %v943_v9 = vadd.f32 %v942_v7, %v808_v3  ;;  %v964_v11 = vmul.f32 0.5, %v939_v5 }
 0x25d   : > { %v944_v12 = vpop.f32.mrf.mxu1 }
 0x25e   : > { %v945_v13 = vadd.f32 %v944_v12, %v808_v3  ;;  %v965_v16 = vmul.f32 0.5, %v943_v9  ;;  %3335 = vtanh.f32 %v964_v11 }
 0x25f   : > { %v948_v17 = vpop.f32.mrf.mxu1 }
 0x260   : > { %v966_v18 = vmul.f32 0.5, %v945_v13  ;;  %v949_v19 = vadd.f32 %v948_v17, %v813_v53 }
 0x261   : > { %v950_v21 = vpop.f32.mrf.mxu1 }
 0x262   : > { %3337 = vtanh.f32 %v966_v18  ;;  %v967_v22 = vmul.f32 0.5, %v949_v19  ;;  %v951_v23 = vadd.f32 %v950_v21, %v813_v53 }
 0x263   : > { %3339 = vtanh.f32 %v965_v16 }
 0x264   : > { %3341 = vtanh.f32 %v967_v22  ;;  %v968_v26 = vmul.f32 0.5, %v951_v23 }
 0x265   : > { %3343 = vtanh.f32 %v963_v20 }
 0x266   : > { %3345 = vtanh.f32 %v968_v26 }
 0x267   : > { %3347 = vtanh.f32 %v961_v25  ;;  %v3334_v43 = vpop.eup %3333 }
 0x268   : > { %3349 = vtanh.f32 %v927_v30  ;;  %v978_v49 = vadd.f32 1.0, %v3334_v43  ;;  %v1001_v30 = vld [vmem:[%s4776_s6] sm:$0xff]  ;;  %v1030_v43 = vpop.permute.xlu1 %1029 }
 0x269   : > { %3351 = vtanh.f32 %v925_v31  ;;  %v1002_v31 = vld [vmem:[%s4776_s6 + $0x8] sm:$0xff] }
 0x26a   : > { %3353 = vtanh.f32 %v921_v33  ;;  %v986_v15 = vmul.f32 0.5, %v978_v49  ;;  %v1003_v33 = vld [vmem:[%s4776_s6 + $0x10] sm:$0xff] }
 0x26b   : > { %3355 = vtanh.f32 %v919_v35  ;;  %v3336_v48 = vpop.eup %3335 }
 0x26c   : > { %3357 = vtanh.f32 %v915_v37  ;;  %v980_v62 = vadd.f32 1.0, %v3336_v48 }
 0x26d   : > { %3359 = vtanh.f32 %v913_v39  ;;  %v1035_v39 = vpop.permute.xlu0 %1034 }
 0x26e   : > { %3361 = vtanh.f32 %v909_v41  ;;  %v988_v9 = vmul.f32 0.5, %v980_v62 }
 0x26f   : > { %v3338_v53 = vpop.eup %3337  ;;  %3363 = vtanh.f32 %v907_v47 }
 0x270   : > { %v3340_v57 = vpop.eup %3339  ;;  %v982_v54 = vadd.f32 1.0, %v3338_v53 }
 0x271   : > { %v3342_v56 = vpop.eup %3341  ;;  %v981_v60 = vadd.f32 1.0, %v3340_v57 }
 0x272   : > { %v3344_v55 = vpop.eup %3343  ;;  %v983_v52 = vadd.f32 1.0, %v3342_v56  ;;  %v990_v2 = vmul.f32 0.5, %v982_v54 }
 0x273   : > { %v3346_v58 = vpop.eup %3345  ;;  %v979_v63 = vadd.f32 1.0, %v3344_v55  ;;  %v989_v7 = vmul.f32 0.5, %v981_v60  ;;  %v1025_v55 = vpop.permute.xlu0 %1024 }
 0x274   : > { %v3348_v51 = vpop.eup %3347  ;;  %v984_v50 = vadd.f32 1.0, %v3346_v58  ;;  %v991_v1 = vmul.f32 0.5, %v983_v52 }
 0x275   : > { %v3350_v4 = vpop.eup %3349  ;;  %v977_v5 = vadd.f32 1.0, %v3348_v51  ;;  %v987_v12 = vmul.f32 0.5, %v979_v63 }
 0x276   : > { %v992_v3 = vmul.f32 0.5, %v984_v50  ;;  %v3352_v8 = vpop.eup %3351  ;;  %v1020_v50 = vpop.permute.xlu1 %1019 }
 0x277   : > { %v3354_v11 = vpop.eup %3353  ;;  %v999_v13 = vmul.f32 %v3352_v8, %v991_v1  ;;  %v985_v18 = vmul.f32 0.5, %v977_v5 }
 0x278   : > { %v1000_v10 = vmul.f32 %v3350_v4, %v992_v3  ;;  %v3356_v14 = vpop.eup %3355  ;;  %v998_v16 = vmul.f32 %v3354_v11, %v990_v2  ;;  %v1005_v3 = vld [vmem:[%s4776_s6 + $0x20] sm:$0xff] }
 0x279   : > { %v3358_v17 = vpop.eup %3357  ;;  %v997_v19 = vmul.f32 %v3356_v14, %v989_v7  ;;  %v3137_v14 = vld [vmem:[%s4775_s5 + $0x70] sm:$0xff] }
 0x27a   : > { %1106 = vmatprep.subr.mxu0 %v1000_v10  ;;  %v3360_v20 = vpop.eup %3359  ;;  %v996_v21 = vmul.f32 %v3358_v17, %v988_v9  ;;  %v3135_v17 = vld [vmem:[%s4775_s5 + $0x60] sm:$0xff] }
 0x27b   : > { %1107 = vmatpush1.msra.mxu0 %v999_v13  ;;  %v3362_v22 = vpop.eup %3361  ;;  %v995_v23 = vmul.f32 %v3360_v20, %v987_v12  ;;  %v1008_v12 = vld [vmem:[%s4776_s6 + $0x38] sm:$0xff]  ;;  %v3131_v20 = vld [vmem:[%s4775_s5 + $0x40] sm:$0xff] }
 0x27c   : > { %1108 = vmatprep.subr.mxu0 %v998_v16  ;;  %v3364_v25 = vpop.eup %3363  ;;  %v994_v26 = vmul.f32 %v3362_v22, %v986_v15  ;;  %v3138_v13 = vld [vmem:[%s4775_s5 + $0x78] sm:$0xff]  ;;  %v3136_v15 = vld [vmem:[%s4775_s5 + $0x68] sm:$0xff]  ;;  %v3165_v22 = vld [vmem:[%s4777_s7 + $0x50] sm:$0xff] }
 0x27d   : > { %1109 = vmatpush1.msra.mxu0 %v997_v19  ;;  %v993_v27 = vmul.f32 %v3364_v25, %v985_v18  ;;  %v3134_v16 = vld [vmem:[%s4775_s5 + $0x58] sm:$0xff]  ;;  %v3133_v18 = vld [vmem:[%s4775_s5 + $0x50] sm:$0xff]  ;;  %v3132_v19 = vld [vmem:[%s4775_s5 + $0x48] sm:$0xff] }
 0x27e   : > { %1110 = vmatprep.subr.mxu0 %v996_v21  ;;  %v3166_v21 = vld [vmem:[%s4777_s7 + $0x58] sm:$0xff]  ;;  %v3163_v25 = vld [vmem:[%s4777_s7 + $0x40] sm:$0xff] }
 0x27f   : > { %1111 = vmatpush1.msra.mxu0 %v995_v23  ;;  %v3164_v23 = vld [vmem:[%s4777_s7 + $0x48] sm:$0xff] }
 0x280   : > { %1112 = vmatprep.subr.mxu0 %v994_v26 }
 0x281   : > { %1113 = vmatpush1.msra.mxu0 %v993_v27 }
 0x282   : > { %3115 = vmatmul.mubr.msk.f32.vlgmr.msra.gmra.mxu0 %vm1057_vm7, %v1001_v30 }
 0x283   : > { %1152 = vmatprep.mubr.f32.mxu0 %v3527_v0 }
 0x286   : > { %3116 = vmatmul.mubr.msk.f32.gmra.mxu0 %vm1057_vm7, %v1002_v31 }
 0x287   : > { %1158 = vmatprep.mubr.f32.mxu0 %v3527_v0 }
 0x28a   : > { %3117 = vmatmul.mubr.msk.f32.gmra.mxu0 %vm1057_vm7, %v1003_v33 }
 0x28b   : > { %1164 = vmatprep.mubr.f32.mxu0 %v3527_v0 }
 0x28e   : > { %3118 = vmatmul.mubr.msk.f32.gmra.mxu0 %vm1057_vm7, %v1004_v34 }
 0x28f   : > { %1170 = vmatprep.mubr.f32.mxu0 %v3527_v0 }
 0x292   : > { %3119 = vmatmul.mubr.msk.f32.gmra.mxu0 %vm1057_vm7, %v1005_v3 }
 0x293   : > { %1176 = vmatprep.mubr.f32.mxu0 %v3527_v0 }
 0x342   : > { %v1148_v35 = vpop.f32.mrf.mxu0 }
 0x344   : > { %v1150_v37 = vpop.f32.mrf.mxu0 }
 0x346   : > { %v1154_v38 = vpop.f32.mrf.mxu0 }
 0x347   : > { %v1155_v52 = vadd.f32 %v1154_v38, %v1025_v55 }
 0x348   : > { %v1156_v41 = vpop.f32.mrf.mxu0 }
 0x349   : > { %v1157_v63 = vadd.f32 %v1156_v41, %v1025_v55 }
 0x34a   : > { %v1160_v47 = vpop.f32.mrf.mxu0 }
 0x34b   : > { %v1161_v48 = vadd.f32 %v1160_v47, %v1030_v43  ;;  %v1198_v7 = vadd.f32 %v1157_v63, %v3743_v44 }
 0x34c   : > { %v1162_v53 = vpop.f32.mrf.mxu0 }
 0x34d   : > { %v1199_v57 = vadd.f32 %v1161_v48, %v3724_v29  ;;  %v1163_v56 = vadd.f32 %v1162_v53, %v1030_v43  ;;  %v1149_v29 = vadd.f32 %v1148_v35, %v1020_v50  ;;  %v3967_v10 = vmul.f32 %v1198_v7, %v3721_v28  ;;  %v3123_v7 = vld [vmem:[%s4774_s4 + $0x40] sm:$0xff] }
 0x34e   : > { %v1166_v54 = vpop.f32.mrf.mxu0 }
 0x34f   : > { %v3927_v58 = vmul.f32 %v1199_v57, %v3719_v24  ;;  %v1200_v60 = vadd.f32 %v1163_v56, %v3727_v32  ;;  %v1167_v51 = vadd.f32 %v1166_v54, %v1035_v39  ;;  %v1197_v32 = vadd.f32 %v1155_v52, %v3739_v42 }
 0x350   : > { %v1168_v62 = vpop.f32.mrf.mxu0  ;;  %v1195_v42 = vadd.f32 %v1149_v29, %v3747_v45  ;;  %v1007_v45 = vld [vmem:[%s4776_s6 + $0x30] sm:$0xff] }
 0x351   : > { %v3931_v1 = vmul.f32 %v1200_v60, %v3721_v28  ;;  %v1201_v49 = vadd.f32 %v1167_v51, %v3731_v36  ;;  %v1169_v2 = vadd.f32 %v1168_v62, %v1035_v39  ;;  %1262 = vrot.lane.b32.xlu0 %v3927_v58, %s3531_s0  ;;  %v1151_v36 = vadd.f32 %v1150_v37, %v1020_v50 }
 0x352   : > { %v3959_v9 = vmul.f32 %v1197_v32, %v3719_v24  ;;  %v3975_v11 = vmul.f32 %v1195_v42, %v3719_v24  ;;  %v3125_v42 = vld [vmem:[%s4774_s4 + $0x50] sm:$0xff] }
 0x353   : > { %v3941_v4 = vmul.f32 %v1201_v49, %v3719_v24  ;;  %v1202_v5 = vadd.f32 %v1169_v2, %v3735_v40  ;;  %1270 = vrot.lane.b32.xlu1 %v3931_v1, %s3531_s0  ;;  %v1006_v40 = vld [vmem:[%s4776_s6 + $0x28] sm:$0xff]  ;;  %v1196_v44 = vadd.f32 %v1151_v36, %v3751_v46 }
 0x354   : > { %3120 = vmatmul.mubr.msk.f32.gmra.mxu0 %vm1057_vm7, %v1006_v40  ;;  %v3124_v40 = vld [vmem:[%s4774_s4 + $0x48] sm:$0xff] }
 0x355   : > { %v3950_v8 = vmul.f32 %v1202_v5, %v3721_v28  ;;  %1264 = vrot.lane.b32.xlu0 %v3941_v4, %s3531_s0  ;;  %1182 = vmatprep.mubr.f32.mxu0 %v3527_v0  ;;  %v3982_v46 = vmul.f32 %v1196_v44, %v3721_v28  ;;  %v3126_v44 = vld [vmem:[%s4774_s4 + $0x58] sm:$0xff] }
 0x357   : > { %1272 = vrot.lane.b32.xlu1 %v3950_v8, %s3531_s0 }
 0x358   : > { %3121 = vmatmul.mubr.msk.f32.gmra.mxu0 %vm1057_vm7, %v1007_v45  ;;  %v3127_v45 = vld [vmem:[%s4774_s4 + $0x60] sm:$0xff] }
 0x359   : > { %1260 = vrot.lane.b32.xlu0 %v3959_v9, %s3531_s0  ;;  %1188 = vmatprep.mubr.f32.mxu0 %v3527_v0 }
 0x35b   : > { %1268 = vrot.lane.b32.xlu1 %v3967_v10, %s3531_s0 }
 0x35c   : > { %3122 = vmatmul.mubr.msk.f32.gmra.mxu0 %vm1057_vm7, %v1008_v12  ;;  %v3128_v12 = vld [vmem:[%s4774_s4 + $0x68] sm:$0xff] }
 0x35d   : > { %1258 = vrot.lane.b32.xlu0 %v3975_v11, %s3531_s0  ;;  %1443 = vmatprep.mubr.f32.mxu0 %v3527_v0 }
 0x35f   : > { %1266 = vrot.lane.b32.xlu1 %v3982_v46, %s3531_s0  ;;  %s3534_s0 = smov 4  }
 0x361   : > { %1225 = vrot.lane.b32.xlu0 %v3941_v4, %s3532_s27 }
 0x363   : > { %1231 = vrot.lane.b32.xlu1 %v3931_v1, %s3532_s27 }
 0x365   : > { %1223 = vrot.lane.b32.xlu0 %v3927_v58, %s3532_s27 }
 0x367   : > { %1233 = vrot.lane.b32.xlu1 %v3950_v8, %s3532_s27 }
 0x369   : > { %1221 = vrot.lane.b32.xlu0 %v3959_v9, %s3532_s27 }
 0x36b   : > { %1229 = vrot.lane.b32.xlu1 %v3967_v10, %s3532_s27 }
 0x36d   : > { %1219 = vrot.lane.b32.xlu0 %v3975_v11, %s3532_s27 }
 0x36f   : > { %1227 = vrot.lane.b32.xlu1 %v3982_v46, %s3532_s27 }
 0x371   : > { %1352 = vperm.xlu0 %3329, %v3138_v13   ;;  %v3129_v13 = vld [vmem:[%s4774_s4 + $0x70] sm:$0xff] }
 0x373   : > { %1347 = vperm.xlu1 %3330, %v3137_v14   ;;  %v3130_v14 = vld [vmem:[%s4774_s4 + $0x78] sm:$0xff] }
 0x375   : > { %1342 = vperm.xlu0 %3329, %v3136_v15   ;;  %v4137_v15 = vpop.f32.mrf.mxu0 }
 0x377   : > { %1332 = vperm.xlu1 %3330, %v3134_v16   ;;  %v4139_v16 = vpop.f32.mrf.mxu0 }
 0x379   : > { %1337 = vperm.xlu0 %3329, %v3135_v17  }
 0x37b   : > { %1327 = vperm.xlu1 %3330, %v3133_v18  }
 0x37d   : > { %1322 = vperm.xlu0 %3329, %v3132_v19  }
 0x37f   : > { %1317 = vperm.xlu1 %3330, %v3131_v20  }
 0x381   : > { %1575 = vperm.xlu0 %3329, %v3166_v21  }
 0x383   : > { %1570 = vperm.xlu1 %3330, %v3165_v22  }
 0x385   : > { %1565 = vperm.xlu0 %3329, %v3164_v23  }
 0x387   : > { %1560 = vperm.xlu1 %3330, %v3163_v25  }
 0x3c3   : > { %v1263_v26 = vpop.permute.xlu0 %1262 }
 0x3c5   : > { %v1271_v27 = vpop.permute.xlu1 %1270 }
 0x3c6   : > { %v1281_v37 = vsel %vm1274_vm9, %v1271_v27, %v1263_v26  ;;  %v1277_v38 = vsel %vm1274_vm9, %v1263_v26, %v1271_v27 }
 0x3c7   : > { %v1265_v30 = vpop.permute.xlu0 %1264 }
 0x3c9   : > { %v1273_v31 = vpop.permute.xlu1 %1272 }
 0x3ca   : > { %v1278_v33 = vsel %vm1274_vm9, %v1265_v30, %v1273_v31  ;;  %v1282_v34 = vsel %vm1274_vm9, %v1273_v31, %v1265_v30 }
 0x3cb   : > { %3139 = vmatprep.subr.msk.mxu0 %vm1284_vm8, %v1282_v34  ;;  %v1261_v35 = vpop.permute.xlu0 %1260 }
 0x3cc   : > { %1388 = vmatpush1.msra.mxu0 %v1278_v33 }
 0x3cd   : > { %v1269_v39 = vpop.permute.xlu1 %1268  ;;  %3140 = vmatprep.subr.msk.mxu0 %vm1284_vm8, %v1281_v37 }
 0x3ce   : > { %v1276_v41 = vsel %vm1274_vm9, %v1261_v35, %v1269_v39  ;;  %v1280_v43 = vsel %vm1274_vm9, %v1269_v39, %v1261_v35  ;;  %1390 = vmatpush1.msra.mxu0 %v1277_v38 }
 0x3cf   : > { %3141 = vmatprep.subr.msk.mxu0 %vm1284_vm8, %v1280_v43  ;;  %v1259_v47 = vpop.permute.xlu0 %1258 }
 0x3d0   : > { %1392 = vmatpush1.msra.mxu0 %v1276_v41 }
 0x3d1   : > { %v1267_v48 = vpop.permute.xlu1 %1266 }
 0x3d2   : > { %v1275_v53 = vsel %vm1274_vm9, %v1259_v47, %v1267_v48  ;;  %v1279_v57 = vsel %vm1274_vm9, %v1267_v48, %v1259_v47 }
 0x3d3   : > { %3142 = vmatprep.subr.msk.mxu0 %vm1284_vm8, %v1279_v57  ;;  %v1226_v56 = vpop.permute.xlu0 %1225 }
 0x3d4   : > { %1394 = vmatpush1.msra.mxu0 %v1275_v53 }
 0x3d5   : > { %v1232_v55 = vpop.permute.xlu1 %1231  ;;  %1395 = vmatprep.subr.mxu0 %v3950_v8 }
 0x3d6   : > { %1396 = vmatpush1.msra.mxu0 %v3941_v4 }
 0x3d7   : > { %1397 = vmatprep.subr.mxu0 %v3931_v1  ;;  %v1224_v54 = vpop.permute.xlu0 %1223 }
 0x3d8   : > { %1398 = vmatpush1.msra.mxu0 %v3927_v58  ;;  %v1238_v63 = vsel %vm1235_vm10, %v1224_v54, %v1232_v55  ;;  %v1242_v49 = vsel %vm1235_vm10, %v1232_v55, %v1224_v54 }
 0x3d9   : > { %v1234_v52 = vpop.permute.xlu1 %1233  ;;  %1399 = vmatprep.subr.mxu0 %v3967_v10 }
 0x3da   : > { %1400 = vmatpush1.msra.mxu0 %v3959_v9  ;;  %v1239_v51 = vsel %vm1235_vm10, %v1226_v56, %v1234_v52  ;;  %v1243_v62 = vsel %vm1235_vm10, %v1234_v52, %v1226_v56 }
 0x3db   : > { %1401 = vmatprep.subr.mxu0 %v3982_v46  ;;  %v1222_v60 = vpop.permute.xlu0 %1221 }
 0x3dc   : > { %1402 = vmatpush1.msra.mxu0 %v3975_v11 }
 0x3dd   : > { %v1230_v50 = vpop.permute.xlu1 %1229  ;;  %1403 = vmatprep.subr.mxu0 %v1239_v51 }
 0x3de   : > { %3143 = vmatpush1.msk.msra.mxu0 %vm1244_vm11, %v1243_v62  ;;  %v1237_v2 = vsel %vm1235_vm10, %v1222_v60, %v1230_v50  ;;  %v1241_v29 = vsel %vm1235_vm10, %v1230_v50, %v1222_v60 }
 0x3df   : > { %1405 = vmatprep.subr.mxu0 %v1238_v63  ;;  %v1220_v3 = vpop.permute.xlu0 %1219 }
 0x3e0   : > { %3144 = vmatpush1.msk.msra.mxu0 %vm1244_vm11, %v1242_v49 }
 0x3e1   : > { %v1228_v32 = vpop.permute.xlu1 %1227  ;;  %1407 = vmatprep.subr.mxu0 %v1237_v2 }
 0x3e2   : > { %v1240_v5 = vsel %vm1235_vm10, %v1228_v32, %v1220_v3  ;;  %3145 = vmatpush1.msk.msra.mxu0 %vm1244_vm11, %v1241_v29  ;;  %v1236_v36 = vsel %vm1235_vm10, %v1220_v3, %v1228_v32 }
 0x3e3   : > { %1409 = vmatprep.subr.mxu0 %v1236_v36 }
 0x3e4   : > { %3146 = vmatpush1.msk.msra.mxu0 %vm1244_vm11, %v1240_v5 }
 0x3e5   : > { %3147 = vmatmul.mubr.msk.f32.vlgmr.msra.gmra.mxu0 %vm815_vm6, %v3123_v7 }
 0x3e6   : > { %1449 = vmatprep.mubr.f32.mxu0 %v3527_v0 }
 0x3e9   : > { %3148 = vmatmul.mubr.msk.f32.gmra.mxu0 %vm815_vm6, %v3124_v40 }
 0x3ea   : > { %1455 = vmatprep.mubr.f32.mxu0 %v3527_v0 }
 0x3ec   : > { %v1353_v30 = vpop.permute.xlu0 %1352 }
 0x3ed   : > { %3149 = vmatmul.mubr.msk.f32.gmra.mxu0 %vm815_vm6, %v3125_v42 }
 0x3ee   : > { %1461 = vmatprep.mubr.f32.mxu0 %v3527_v0  ;;  %v1348_v48 = vpop.permute.xlu1 %1347 }
 0x3f0   : > { %v1343_v35 = vpop.permute.xlu0 %1342 }
 0x3f1   : > { %3150 = vmatmul.mubr.msk.f32.gmra.mxu0 %vm815_vm6, %v3126_v44 }
 0x3f2   : > { %1467 = vmatprep.mubr.f32.mxu0 %v3527_v0  ;;  %v1333_v50 = vpop.permute.xlu1 %1332 }
 0x3f4   : > { %v1338_v41 = vpop.permute.xlu0 %1337 }
 0x3f5   : > { %3151 = vmatmul.mubr.msk.f32.gmra.mxu0 %vm815_vm6, %v3127_v45 }
 0x3f6   : > { %1473 = vmatprep.mubr.f32.mxu0 %v3527_v0  ;;  %v1328_v44 = vpop.permute.xlu1 %1327 }
 0x3f9   : > { %3152 = vmatmul.mubr.msk.f32.gmra.mxu0 %vm815_vm6, %v3128_v12 }
 0x3fa   : > { %1479 = vmatprep.mubr.f32.mxu0 %v3527_v0 }
 0x3fd   : > { %3153 = vmatmul.mubr.msk.f32.gmra.mxu0 %vm815_vm6, %v3129_v13 }
 0x3fe   : > { %1485 = vmatprep.mubr.f32.mxu0 %v3527_v0 }
 0x401   : > { %3154 = vmatmul.mubr.msk.f32.gmra.mxu0 %vm815_vm6, %v3130_v14  ;;  %v1323_v14 = vpop.permute.xlu0 %1322 }
 0x402   : > { %1983 = vmatprep.mubr.f32.mxu0 %v3527_v0 }
 0x414   : > { %v4141_v17 = vpop.f32.mrf.mxu0 }
 0x416   : > { %v4143_v18 = vpop.f32.mrf.mxu0 }
 0x418   : > { %v4145_v19 = vpop.f32.mrf.mxu0 }
 0x41a   : > { %v4147_v20 = vpop.f32.mrf.mxu0 }
 0x41c   : > { %v4149_v21 = vpop.f32.mrf.mxu0 }
 0x41e   : > { %v4151_v22 = vpop.f32.mrf.mxu0 }
 0x4a5   : > { %v1445_v23 = vpop.f32.mrf.mxu0 }
 0x4a7   : > { %v1447_v25 = vpop.f32.mrf.mxu0 }
 0x4a9   : > { %v1451_v26 = vpop.f32.mrf.mxu0 }
 0x4ab   : > { %v1453_v27 = vpop.f32.mrf.mxu0 }
 0x4ad   : > { %v1457_v31 = vpop.f32.mrf.mxu0 }
 0x4af   : > { %v1459_v33 = vpop.f32.mrf.mxu0 }
 0x4b0   : > { %v1460_v13 = vadd.f32 %v1459_v33, %v1328_v44 }
 0x4b1   : > { %v1463_v34 = vpop.f32.mrf.mxu0 }
 0x4b2   : > { %v1464_v12 = vadd.f32 %v1463_v34, %v1333_v50 }
 0x4b3   : > { %v1465_v37 = vpop.f32.mrf.mxu0 }
 0x4b4   : > { %v1466_v45 = vadd.f32 %v1465_v37, %v1333_v50 }
 0x4b5   : > { %v1469_v38 = vpop.f32.mrf.mxu0 }
 0x4b6   : > { %v1470_v63 = vadd.f32 %v1469_v38, %v1338_v41  ;;  %v1454_v38 = vadd.f32 %v1453_v27, %v1323_v14 }
 0x4b7   : > { %v1471_v39 = vpop.f32.mrf.mxu0 }
 0x4b8   : > { %v1472_v47 = vadd.f32 %v1471_v39, %v1338_v41  ;;  %v1500_v40 = vmul.f32 0.5, %v1470_v63  ;;  %v1318_v39 = vpop.permute.xlu1 %1317  ;;  %v1452_v41 = vadd.f32 %v1451_v26, %v1323_v14 }
 0x4b9   : > { %v1475_v43 = vpop.f32.mrf.mxu0 }
 0x4ba   : > { %v1501_v55 = vmul.f32 0.5, %v1472_v47  ;;  %v1476_v52 = vadd.f32 %v1475_v43, %v1343_v35  ;;  %v1448_v43 = vadd.f32 %v1447_v25, %v1318_v39  ;;  %v1446_v47 = vadd.f32 %v1445_v23, %v1318_v39 }
 0x4bb   : > { %v1477_v53 = vpop.f32.mrf.mxu0 }
 0x4bc   : > { %v1478_v57 = vadd.f32 %v1477_v53, %v1343_v35  ;;  %3365 = vtanh.f32 %v1501_v55  ;;  %v1502_v32 = vmul.f32 0.5, %v1476_v52  ;;  %v1458_v35 = vadd.f32 %v1457_v31, %v1328_v44 }
 0x4bd   : > { %v1481_v56 = vpop.f32.mrf.mxu0 }
 0x4be   : > { %v1482_v54 = vadd.f32 %v1481_v56, %v1348_v48  ;;  %v1503_v60 = vmul.f32 0.5, %v1478_v57 }
 0x4bf   : > { %v1483_v51 = vpop.f32.mrf.mxu0 }
 0x4c0   : > { %v1484_v62 = vadd.f32 %v1483_v51, %v1348_v48  ;;  %v1504_v49 = vmul.f32 0.5, %v1482_v54  ;;  %3367 = vtanh.f32 %v1503_v60 }
 0x4c1   : > { %v1487_v2 = vpop.f32.mrf.mxu0 }
 0x4c2   : > { %v1505_v29 = vmul.f32 0.5, %v1484_v62  ;;  %v1488_v3 = vadd.f32 %v1487_v2, %v1353_v30 }
 0x4c3   : > { %v1489_v5 = vpop.f32.mrf.mxu0 }
 0x4c4   : > { %3369 = vtanh.f32 %v1505_v29  ;;  %v1506_v36 = vmul.f32 0.5, %v1488_v3  ;;  %v1490_v7 = vadd.f32 %v1489_v5, %v1353_v30 }
 0x4c5   : > { %3371 = vtanh.f32 %v1504_v49 }
 0x4c6   : > { %3373 = vtanh.f32 %v1506_v36  ;;  %v1507_v42 = vmul.f32 0.5, %v1490_v7 }
 0x4c7   : > { %3375 = vtanh.f32 %v1502_v32 }
 0x4c8   : > { %3377 = vtanh.f32 %v1507_v42 }
 0x4c9   : > { %3379 = vtanh.f32 %v1500_v40  ;;  %v3366_v30 = vpop.eup %3365 }
 0x4ca   : > { %3381 = vtanh.f32 %v1466_v45  ;;  %v1517_v23 = vadd.f32 1.0, %v3366_v30  ;;  %v3156_v30 = vld [vmem:[%s4776_s6 + $0x48] sm:$0xff] }
 0x4cb   : > { %3383 = vtanh.f32 %v1464_v12 }
 0x4cc   : > { %3385 = vtanh.f32 %v1460_v13  ;;  %v1525_v7 = vmul.f32 0.5, %v1517_v23 }
 0x4cd   : > { %3387 = vtanh.f32 %v1458_v35  ;;  %v3368_v48 = vpop.eup %3367 }
 0x4ce   : > { %3389 = vtanh.f32 %v1454_v38  ;;  %v1519_v55 = vadd.f32 1.0, %v3368_v48  ;;  %v3158_v48 = vld [vmem:[%s4776_s6 + $0x58] sm:$0xff] }
 0x4cf   : > { %3391 = vtanh.f32 %v1452_v41 }
 0x4d0   : > { %3393 = vtanh.f32 %v1448_v43  ;;  %v1527_v2 = vmul.f32 0.5, %v1519_v55  ;;  %v3155_v43 = vld [vmem:[%s4776_s6 + $0x40] sm:$0xff] }
 0x4d1   : > { %v3370_v53 = vpop.eup %3369  ;;  %3395 = vtanh.f32 %v1446_v47  ;;  %v3157_v47 = vld [vmem:[%s4776_s6 + $0x50] sm:$0xff] }
 0x4d2   : > { %v3372_v37 = vpop.eup %3371  ;;  %v1521_v31 = vadd.f32 1.0, %v3370_v53 }
 0x4d3   : > { %v3374_v34 = vpop.eup %3373  ;;  %v1520_v56 = vadd.f32 1.0, %v3372_v37 }
 0x4d4   : > { %v3376_v33 = vpop.eup %3375  ;;  %v1522_v27 = vadd.f32 1.0, %v3374_v34  ;;  %v1529_v60 = vmul.f32 0.5, %v1521_v31 }
 0x4d5   : > { %v3378_v57 = vpop.eup %3377  ;;  %v1518_v54 = vadd.f32 1.0, %v3376_v33  ;;  %v1528_v63 = vmul.f32 0.5, %v1520_v56  ;;  %v1576_v33 = vpop.permute.xlu0 %1575 }
 0x4d6   : > { %v3380_v26 = vpop.eup %3379  ;;  %v1523_v25 = vadd.f32 1.0, %v3378_v57  ;;  %v1530_v52 = vmul.f32 0.5, %v1522_v27  ;;  %v1571_v27 = vpop.permute.xlu1 %1570 }
 0x4d7   : > { %v3382_v62 = vpop.eup %3381  ;;  %v1516_v50 = vadd.f32 1.0, %v3380_v26  ;;  %v1526_v32 = vmul.f32 0.5, %v1518_v54 }
 0x4d8   : > { %v1531_v51 = vmul.f32 0.5, %v1523_v25  ;;  %v3384_v49 = vpop.eup %3383 }
 0x4d9   : > { %v3386_v3 = vpop.eup %3385  ;;  %v1538_v5 = vmul.f32 %v3384_v49, %v1530_v52  ;;  %v1524_v44 = vmul.f32 0.5, %v1516_v50  ;;  %v1566_v54 = vpop.permute.xlu0 %1565 }
 0x4da   : > { %v1539_v29 = vmul.f32 %v3382_v62, %v1531_v51  ;;  %v3388_v36 = vpop.eup %3387  ;;  %v1537_v40 = vmul.f32 %v3386_v3, %v1529_v60 }
 0x4db   : > { %v3390_v42 = vpop.eup %3389  ;;  %v1536_v45 = vmul.f32 %v3388_v36, %v1528_v63 }
 0x4dc   : > { %1646 = vmatprep.subr.mxu1 %v1539_v29  ;;  %v3392_v12 = vpop.eup %3391  ;;  %v1535_v13 = vmul.f32 %v3390_v42, %v1527_v2 }
 0x4dd   : > { %1647 = vmatpush1.msra.mxu1 %v1538_v5  ;;  %v3394_v14 = vpop.eup %3393  ;;  %v1534_v35 = vmul.f32 %v3392_v12, %v1526_v32  ;;  %v3190_v12 = vld [vmem:[%s4775_s5 + $0x98] sm:$0xff] }
 0x4de   : > { %1648 = vmatprep.subr.mxu1 %v1537_v40  ;;  %v3396_v38 = vpop.eup %3395  ;;  %v1533_v39 = vmul.f32 %v3394_v14, %v1525_v7  ;;  %v3189_v14 = vld [vmem:[%s4775_s5 + $0x90] sm:$0xff] }
 0x4df   : > { %1649 = vmatpush1.msra.mxu1 %v1536_v45  ;;  %v1532_v41 = vmul.f32 %v3396_v38, %v1524_v44  ;;  %v3192_v45 = vld [vmem:[%s4775_s5 + $0xa8] sm:$0xff]  ;;  %v3187_v38 = vld [vmem:[%s4775_s5 + $0x80] sm:$0xff] }
 0x4e0   : > { %1650 = vmatprep.subr.mxu1 %v1535_v13  ;;  %v3191_v13 = vld [vmem:[%s4775_s5 + $0xa0] sm:$0xff] }
 0x4e1   : > { %1651 = vmatpush1.msra.mxu1 %v1534_v35  ;;  %v3188_v35 = vld [vmem:[%s4775_s5 + $0x88] sm:$0xff] }
 0x4e2   : > { %1652 = vmatprep.subr.mxu1 %v1533_v39  ;;  %v3222_v39 = vld [vmem:[%s4777_s7 + $0x98] sm:$0xff] }
 0x4e3   : > { %1653 = vmatpush1.msra.mxu1 %v1532_v41  ;;  %v3221_v41 = vld [vmem:[%s4777_s7 + $0x90] sm:$0xff] }
 0x4e4   : > { %3171 = vmatmul.mubr.msk.f32.vlgmr.msra.gmra.mxu1 %vm1057_vm7, %v3155_v43  ;;  %v3220_v43 = vld [vmem:[%s4777_s7 + $0x88] sm:$0xff] }
 0x4e5   : > { %1692 = vmatprep.mubr.f32.mxu1 %v3527_v0 }
 0x4e8   : > { %3172 = vmatmul.mubr.msk.f32.gmra.mxu1 %vm1057_vm7, %v3156_v30  ;;  %v3219_v30 = vld [vmem:[%s4777_s7 + $0x80] sm:$0xff] }
 0x4e9   : > { %1698 = vmatprep.mubr.f32.mxu1 %v3527_v0 }
 0x4ec   : > { %3173 = vmatmul.mubr.msk.f32.gmra.mxu1 %vm1057_vm7, %v3157_v47 }
 0x4ed   : > { %1704 = vmatprep.mubr.f32.mxu1 %v3527_v0 }
 0x4f0   : > { %3174 = vmatmul.mubr.msk.f32.gmra.mxu1 %vm1057_vm7, %v3158_v48 }
 0x4f1   : > { %1710 = vmatprep.mubr.f32.mxu1 %v3527_v0 }
 0x5a4   : > { %v1688_v53 = vpop.f32.mrf.mxu1 }
 0x5a6   : > { %v1690_v37 = vpop.f32.mrf.mxu1 }
 0x5a8   : > { %v1694_v34 = vpop.f32.mrf.mxu1 }
 0x5a9   : > { %v1695_v23 = vadd.f32 %v1694_v34, %v1566_v54 }
 0x5aa   : > { %v1696_v31 = vpop.f32.mrf.mxu1 }
 0x5ab   : > { %v1697_v63 = vadd.f32 %v1696_v31, %v1566_v54  ;;  %v1737_v32 = vadd.f32 %v1695_v23, %v3959_v9 }
 0x5ac   : > { %v1700_v57 = vpop.f32.mrf.mxu1 }
 0x5ad   : > { %v1701_v56 = vadd.f32 %v1700_v57, %v1571_v27  ;;  %v1738_v7 = vadd.f32 %v1697_v63, %v3967_v10  ;;  %v4196_v42 = vmul.f32 %v1737_v32, %v3719_v24 }
 0x5ae   : > { %v1702_v26 = vpop.f32.mrf.mxu1 }
 0x5af   : > { %v1739_v55 = vadd.f32 %v1701_v56, %v3927_v58  ;;  %v1703_v25 = vadd.f32 %v1702_v26, %v1571_v27  ;;  %v1561_v58 = vpop.permute.xlu1 %1560 }
 0x5b0   : > { %v1706_v52 = vpop.f32.mrf.mxu1  ;;  %v1689_v3 = vadd.f32 %v1688_v53, %v1561_v58  ;;  %v1691_v36 = vadd.f32 %v1690_v37, %v1561_v58 }
 0x5b1   : > { %v4175_v60 = vmul.f32 %v1739_v55, %v3719_v24  ;;  %v1740_v51 = vadd.f32 %v1703_v25, %v3931_v1  ;;  %v1707_v62 = vadd.f32 %v1706_v52, %v1576_v33 }
 0x5b2   : > { %v1708_v50 = vpop.f32.mrf.mxu1  ;;  %v1735_v40 = vadd.f32 %v1689_v3, %v3975_v11  ;;  %v1736_v9 = vadd.f32 %v1691_v36, %v3982_v46  ;;  %v3194_v11 = vld [vmem:[%s4775_s5 + $0xb8] sm:$0xff]  ;;  %v3193_v46 = vld [vmem:[%s4775_s5 + $0xb0] sm:$0xff] }
 0x5b3   : > { %v4179_v49 = vmul.f32 %v1740_v51, %v3721_v28  ;;  %v1741_v2 = vadd.f32 %v1707_v62, %v3941_v4  ;;  %v1709_v29 = vadd.f32 %v1708_v50, %v1576_v33  ;;  %1802 = vrot.lane.b32.xlu0 %v4175_v60, %s3533_s18 }
 0x5b4   : > { %v4205_v10 = vmul.f32 %v1735_v40, %v3719_v24  ;;  %v4209_v44 = vmul.f32 %v1736_v9, %v3721_v28 }
 0x5b5   : > { %v4185_v5 = vmul.f32 %v1741_v2, %v3719_v24  ;;  %v1742_v1 = vadd.f32 %v1709_v29, %v3950_v8  ;;  %1810 = vrot.lane.b32.xlu1 %v4179_v49, %s3533_s18  ;;  %v4201_v8 = vmul.f32 %v1738_v7, %v3721_v28 }
 0x5b7   : > { %v4191_v4 = vmul.f32 %v1742_v1, %v3721_v28  ;;  %1804 = vrot.lane.b32.xlu0 %v4185_v5, %s3533_s18 }
 0x5b9   : > { %1812 = vrot.lane.b32.xlu1 %v4191_v4, %s3533_s18 }
 0x5bb   : > { %1800 = vrot.lane.b32.xlu0 %v4196_v42, %s3533_s18 }
 0x5bd   : > { %1808 = vrot.lane.b32.xlu1 %v4201_v8, %s3533_s18 }
 0x5bf   : > { %1798 = vrot.lane.b32.xlu0 %v4205_v10, %s3533_s18 }
 0x5c1   : > { %1806 = vrot.lane.b32.xlu1 %v4209_v44, %s3533_s18 }
 0x5c3   : > { %1765 = vrot.lane.b32.xlu0 %v4185_v5, %s3534_s0 }
 0x5c5   : > { %1771 = vrot.lane.b32.xlu1 %v4179_v49, %s3534_s0 }
 0x5c7   : > { %1763 = vrot.lane.b32.xlu0 %v4175_v60, %s3534_s0 }
 0x5c9   : > { %1773 = vrot.lane.b32.xlu1 %v4191_v4, %s3534_s0 }
 0x5cb   : > { %1761 = vrot.lane.b32.xlu0 %v4196_v42, %s3534_s0 }
 0x5cd   : > { %1769 = vrot.lane.b32.xlu1 %v4201_v8, %s3534_s0 }
 0x5cf   : > { %1759 = vrot.lane.b32.xlu0 %v4205_v10, %s3534_s0 }
 0x5d1   : > { %1767 = vrot.lane.b32.xlu1 %v4209_v44, %s3534_s0 }
 0x5d3   : > { %1892 = vperm.xlu0 %3329, %v3194_v11  }
 0x5d5   : > { %1887 = vperm.xlu1 %3330, %v3193_v46  }
 0x5d7   : > { %1882 = vperm.xlu0 %3329, %v3192_v45   ;;  %v3179_v45 = vld [vmem:[%s4774_s4 + $0x80] sm:$0xff] }
 0x5d9   : > { %1872 = vperm.xlu1 %3330, %v3190_v12   ;;  %v3180_v12 = vld [vmem:[%s4774_s4 + $0x88] sm:$0xff] }
 0x5db   : > { %1877 = vperm.xlu0 %3329, %v3191_v13   ;;  %v3181_v13 = vld [vmem:[%s4774_s4 + $0x90] sm:$0xff] }
 0x5dd   : > { %1867 = vperm.xlu1 %3330, %v3189_v14   ;;  %v3182_v14 = vld [vmem:[%s4774_s4 + $0x98] sm:$0xff] }
 0x5df   : > { %1862 = vperm.xlu0 %3329, %v3188_v35   ;;  %v3183_v35 = vld [vmem:[%s4774_s4 + $0xa0] sm:$0xff] }
 0x5e1   : > { %1857 = vperm.xlu1 %3330, %v3187_v38   ;;  %v3184_v38 = vld [vmem:[%s4774_s4 + $0xa8] sm:$0xff] }
 0x5e3   : > { %2115 = vperm.xlu0 %3329, %v3222_v39   ;;  %v3185_v39 = vld [vmem:[%s4774_s4 + $0xb0] sm:$0xff] }
 0x5e5   : > { %2110 = vperm.xlu1 %3330, %v3221_v41   ;;  %v3186_v41 = vld [vmem:[%s4774_s4 + $0xb8] sm:$0xff] }
 0x5e7   : > { %2105 = vperm.xlu0 %3329, %v3220_v43   ;;  %v3159_v43 = vld [vmem:[%s4776_s6 + $0x60] sm:$0xff] }
 0x5e8   : > { %3175 = vmatmul.mubr.msk.f32.gmra.mxu1 %vm1057_vm7, %v3159_v43 }
 0x5e9   : > { %2100 = vperm.xlu1 %3330, %v3219_v30   ;;  %1716 = vmatprep.mubr.f32.mxu1 %v3527_v0  ;;  %v3160_v30 = vld [vmem:[%s4776_s6 + $0x68] sm:$0xff] }
 0x5ec   : > { %3176 = vmatmul.mubr.msk.f32.gmra.mxu1 %vm1057_vm7, %v3160_v30 }
 0x5ed   : > { %1722 = vmatprep.mubr.f32.mxu1 %v3527_v0 }
 0x625   : > { %v1803_v47 = vpop.permute.xlu0 %1802 }
 0x627   : > { %v1811_v48 = vpop.permute.xlu1 %1810 }
 0x628   : > { %v1821_v27 = vsel %vm1814_vm13, %v1811_v48, %v1803_v47  ;;  %v1817_v57 = vsel %vm1814_vm13, %v1803_v47, %v1811_v48  ;;  %v3161_v47 = vld [vmem:[%s4776_s6 + $0x70] sm:$0xff]  ;;  %v3162_v48 = vld [vmem:[%s4776_s6 + $0x78] sm:$0xff] }
 0x629   : > { %v1805_v53 = vpop.permute.xlu0 %1804  ;;  %3177 = vmatmul.mubr.msk.f32.gmra.mxu1 %vm1057_vm7, %v3161_v47 }
 0x62a   : > { %1728 = vmatprep.mubr.f32.mxu1 %v3527_v0 }
 0x62b   : > { %v1813_v37 = vpop.permute.xlu1 %1812 }
 0x62c   : > { %v1818_v34 = vsel %vm1814_vm13, %v1805_v53, %v1813_v37  ;;  %v1822_v33 = vsel %vm1814_vm13, %v1813_v37, %v1805_v53 }
 0x62d   : > { %3195 = vmatprep.subr.msk.mxu0 %vm1824_vm12, %v1822_v33  ;;  %v1801_v31 = vpop.permute.xlu0 %1800  ;;  %3178 = vmatmul.mubr.msk.f32.gmra.mxu1 %vm1057_vm7, %v3162_v48 }
 0x62e   : > { %1928 = vmatpush1.msra.mxu0 %v1818_v34  ;;  %2226 = vmatprep.mubr.f32.mxu1 %v3527_v0 }
 0x62f   : > { %v1809_v56 = vpop.permute.xlu1 %1808  ;;  %3196 = vmatprep.subr.msk.mxu0 %vm1824_vm12, %v1821_v27 }
 0x630   : > { %v1816_v26 = vsel %vm1814_vm13, %v1801_v31, %v1809_v56  ;;  %v1820_v55 = vsel %vm1814_vm13, %v1809_v56, %v1801_v31  ;;  %1930 = vmatpush1.msra.mxu0 %v1817_v57 }
 0x631   : > { %3197 = vmatprep.subr.msk.mxu0 %vm1824_vm12, %v1820_v55  ;;  %v1799_v25 = vpop.permute.xlu0 %1798 }
 0x632   : > { %1932 = vmatpush1.msra.mxu0 %v1816_v26 }
 0x633   : > { %v1807_v54 = vpop.permute.xlu1 %1806 }
 0x634   : > { %v1815_v52 = vsel %vm1814_vm13, %v1799_v25, %v1807_v54  ;;  %v1819_v23 = vsel %vm1814_vm13, %v1807_v54, %v1799_v25 }
 0x635   : > { %3198 = vmatprep.subr.msk.mxu0 %vm1824_vm12, %v1819_v23  ;;  %v1766_v51 = vpop.permute.xlu0 %1765 }
 0x636   : > { %1934 = vmatpush1.msra.mxu0 %v1815_v52 }
 0x637   : > { %v1772_v62 = vpop.permute.xlu1 %1771  ;;  %1935 = vmatprep.subr.mxu0 %v4191_v4 }
 0x638   : > { %1936 = vmatpush1.msra.mxu0 %v4185_v5 }
 0x639   : > { %1937 = vmatprep.subr.mxu0 %v4179_v49  ;;  %v1764_v50 = vpop.permute.xlu0 %1763 }
 0x63a   : > { %1938 = vmatpush1.msra.mxu0 %v4175_v60  ;;  %v1778_v32 = vsel %vm1775_vm14, %v1764_v50, %v1772_v62  ;;  %v1782_v1 = vsel %vm1775_vm14, %v1772_v62, %v1764_v50 }
 0x63b   : > { %v1774_v63 = vpop.permute.xlu1 %1773  ;;  %1939 = vmatprep.subr.mxu0 %v4201_v8 }
 0x63c   : > { %1940 = vmatpush1.msra.mxu0 %v4196_v42  ;;  %v1779_v29 = vsel %vm1775_vm14, %v1766_v51, %v1774_v63  ;;  %v1783_v58 = vsel %vm1775_vm14, %v1774_v63, %v1766_v51 }
 0x63d   : > { %1941 = vmatprep.subr.mxu0 %v4209_v44  ;;  %v1762_v2 = vpop.permute.xlu0 %1761 }
 0x63e   : > { %1942 = vmatpush1.msra.mxu0 %v4205_v10 }
 0x63f   : > { %v1770_v3 = vpop.permute.xlu1 %1769  ;;  %1943 = vmatprep.subr.mxu0 %v1779_v29 }
 0x640   : > { %3199 = vmatpush1.msk.msra.mxu0 %vm1784_vm15, %v1783_v58  ;;  %v1777_v36 = vsel %vm1775_vm14, %v1762_v2, %v1770_v3  ;;  %v1781_v7 = vsel %vm1775_vm14, %v1770_v3, %v1762_v2 }
 0x641   : > { %1945 = vmatprep.subr.mxu0 %v1778_v32  ;;  %v1760_v40 = vpop.permute.xlu0 %1759 }
 0x642   : > { %3200 = vmatpush1.msk.msra.mxu0 %vm1784_vm15, %v1782_v1 }
 0x643   : > { %v1768_v9 = vpop.permute.xlu1 %1767  ;;  %1947 = vmatprep.subr.mxu0 %v1777_v36 }
 0x644   : > { %v1780_v11 = vsel %vm1775_vm14, %v1768_v9, %v1760_v40  ;;  %3201 = vmatpush1.msk.msra.mxu0 %vm1784_vm15, %v1781_v7  ;;  %v1776_v46 = vsel %vm1775_vm14, %v1760_v40, %v1768_v9 }
 0x645   : > { %1949 = vmatprep.subr.mxu0 %v1776_v46 }
 0x646   : > { %3202 = vmatpush1.msk.msra.mxu0 %vm1784_vm15, %v1780_v11 }
 0x647   : > { %3203 = vmatmul.mubr.msk.f32.vlgmr.msra.gmra.mxu0 %vm815_vm6, %v3179_v45 }
 0x648   : > { %1989 = vmatprep.mubr.f32.mxu0 %v3527_v0 }
 0x64b   : > { %3204 = vmatmul.mubr.msk.f32.gmra.mxu0 %vm815_vm6, %v3180_v12 }
 0x64c   : > { %1995 = vmatprep.mubr.f32.mxu0 %v3527_v0 }
 0x64e   : > { %v1893_v31 = vpop.permute.xlu0 %1892 }
 0x64f   : > { %3205 = vmatmul.mubr.msk.f32.gmra.mxu0 %vm815_vm6, %v3181_v13 }
 0x650   : > { %2001 = vmatprep.mubr.f32.mxu0 %v3527_v0  ;;  %v1888_v62 = vpop.permute.xlu1 %1887 }
 0x652   : > { %v1883_v26 = vpop.permute.xlu0 %1882 }
 0x653   : > { %3206 = vmatmul.mubr.msk.f32.gmra.mxu0 %vm815_vm6, %v3182_v14 }
 0x654   : > { %2007 = vmatprep.mubr.f32.mxu0 %v3527_v0  ;;  %v1873_v7 = vpop.permute.xlu1 %1872 }
 0x656   : > { %v1878_v52 = vpop.permute.xlu0 %1877 }
 0x657   : > { %3207 = vmatmul.mubr.msk.f32.gmra.mxu0 %vm815_vm6, %v3183_v35 }
 0x658   : > { %2013 = vmatprep.mubr.f32.mxu0 %v3527_v0 }
 0x65a   : > { %v1863_v48 = vpop.permute.xlu0 %1862 }
 0x65b   : > { %3208 = vmatmul.mubr.msk.f32.gmra.mxu0 %vm815_vm6, %v3184_v38 }
 0x65c   : > { %2019 = vmatprep.mubr.f32.mxu0 %v3527_v0 }
 0x65f   : > { %3209 = vmatmul.mubr.msk.f32.gmra.mxu0 %vm815_vm6, %v3185_v39 }
 0x660   : > { %2025 = vmatprep.mubr.f32.mxu0 %v3527_v0 }
 0x663   : > { %3210 = vmatmul.mubr.msk.f32.gmra.mxu0 %vm815_vm6, %v3186_v41  ;;  %v1868_v41 = vpop.permute.xlu1 %1867 }
 0x664   : > { %2523 = vmatprep.mubr.f32.mxu0 %v3527_v0 }
 0x707   : > { %v1985_v53 = vpop.f32.mrf.mxu0 }
 0x709   : > { %v1987_v37 = vpop.f32.mrf.mxu0 }
 0x70b   : > { %v1991_v34 = vpop.f32.mrf.mxu0 }
 0x70d   : > { %v1993_v33 = vpop.f32.mrf.mxu0 }
 0x70f   : > { %v1997_v27 = vpop.f32.mrf.mxu0 }
 0x711   : > { %v1999_v57 = vpop.f32.mrf.mxu0 }
 0x712   : > { %v2000_v47 = vadd.f32 %v1999_v57, %v1868_v41 }
 0x713   : > { %v2003_v56 = vpop.f32.mrf.mxu0 }
 0x714   : > { %v2004_v30 = vadd.f32 %v2003_v56, %v1873_v7 }
 0x715   : > { %v2005_v55 = vpop.f32.mrf.mxu0 }
 0x716   : > { %v2006_v43 = vadd.f32 %v2005_v55, %v1873_v7 }
 0x717   : > { %v2009_v25 = vpop.f32.mrf.mxu0 }
 0x718   : > { %v2010_v40 = vadd.f32 %v2009_v25, %v1878_v52  ;;  %v1994_v25 = vadd.f32 %v1993_v33, %v1863_v48 }
 0x719   : > { %v2011_v54 = vpop.f32.mrf.mxu0 }
 0x71a   : > { %v2012_v51 = vadd.f32 %v2011_v54, %v1878_v52  ;;  %v2040_v38 = vmul.f32 0.5, %v2010_v40  ;;  %v1858_v54 = vpop.permute.xlu1 %1857  ;;  %v1992_v52 = vadd.f32 %v1991_v34, %v1863_v48 }
 0x71b   : > { %v2015_v23 = vpop.f32.mrf.mxu0 }
 0x71c   : > { %v2041_v29 = vmul.f32 0.5, %v2012_v51  ;;  %v2016_v3 = vadd.f32 %v2015_v23, %v1883_v26  ;;  %v1988_v23 = vadd.f32 %v1987_v37, %v1858_v54  ;;  %v1986_v51 = vadd.f32 %v1985_v53, %v1858_v54 }
 0x71d   : > { %v2017_v50 = vpop.f32.mrf.mxu0 }
 0x71e   : > { %v2018_v63 = vadd.f32 %v2017_v50, %v1883_v26  ;;  %3397 = vtanh.f32 %v2041_v29  ;;  %v2042_v12 = vmul.f32 0.5, %v2016_v3  ;;  %v1998_v26 = vadd.f32 %v1997_v27, %v1868_v41 }
 0x71f   : > { %v2021_v2 = vpop.f32.mrf.mxu0 }
 0x720   : > { %v2022_v58 = vadd.f32 %v2021_v2, %v1888_v62  ;;  %v2043_v32 = vmul.f32 0.5, %v2018_v63 }
 0x721   : > { %v2023_v1 = vpop.f32.mrf.mxu0 }
 0x722   : > { %v2024_v36 = vadd.f32 %v2023_v1, %v1888_v62  ;;  %v2044_v9 = vmul.f32 0.5, %v2022_v58  ;;  %3399 = vtanh.f32 %v2043_v32 }
 0x723   : > { %v2027_v11 = vpop.f32.mrf.mxu0 }
 0x724   : > { %v2045_v46 = vmul.f32 0.5, %v2024_v36  ;;  %v2028_v45 = vadd.f32 %v2027_v11, %v1893_v31 }
 0x725   : > { %v2029_v13 = vpop.f32.mrf.mxu0 }
 0x726   : > { %3401 = vtanh.f32 %v2045_v46  ;;  %v2046_v14 = vmul.f32 0.5, %v2028_v45  ;;  %v2030_v35 = vadd.f32 %v2029_v13, %v1893_v31 }
 0x727   : > { %3403 = vtanh.f32 %v2044_v9 }
 0x728   : > { %3405 = vtanh.f32 %v2046_v14  ;;  %v2047_v39 = vmul.f32 0.5, %v2030_v35 }
 0x729   : > { %3407 = vtanh.f32 %v2042_v12 }
 0x72a   : > { %3409 = vtanh.f32 %v2047_v39 }
 0x72b   : > { %3411 = vtanh.f32 %v2040_v38  ;;  %v3398_v31 = vpop.eup %3397 }
 0x72c   : > { %3413 = vtanh.f32 %v2006_v43  ;;  %v2057_v53 = vadd.f32 1.0, %v3398_v31  ;;  %v3212_v31 = vld [vmem:[%s4776_s6 + $0x88] sm:$0xff] }
 0x72d   : > { %3415 = vtanh.f32 %v2004_v30 }
 0x72e   : > { %3417 = vtanh.f32 %v2000_v47  ;;  %v2065_v35 = vmul.f32 0.5, %v2057_v53 }
 0x72f   : > { %3419 = vtanh.f32 %v1998_v26  ;;  %v3400_v62 = vpop.eup %3399 }
 0x730   : > { %3421 = vtanh.f32 %v1994_v25  ;;  %v2059_v29 = vadd.f32 1.0, %v3400_v62  ;;  %v3214_v62 = vld [vmem:[%s4776_s6 + $0x98] sm:$0xff] }
 0x731   : > { %3423 = vtanh.f32 %v1992_v52 }
 0x732   : > { %3425 = vtanh.f32 %v1988_v23  ;;  %v2067_v11 = vmul.f32 0.5, %v2059_v29  ;;  %v3211_v23 = vld [vmem:[%s4776_s6 + $0x80] sm:$0xff] }
 0x733   : > { %v3402_v50 = vpop.eup %3401  ;;  %3427 = vtanh.f32 %v1986_v51  ;;  %v3213_v51 = vld [vmem:[%s4776_s6 + $0x90] sm:$0xff] }
 0x734   : > { %v3404_v55 = vpop.eup %3403  ;;  %v2061_v27 = vadd.f32 1.0, %v3402_v50  ;;  %v3215_v50 = vld [vmem:[%s4776_s6 + $0xa0] sm:$0xff] }
 0x735   : > { %v3406_v56 = vpop.eup %3405  ;;  %v2060_v2 = vadd.f32 1.0, %v3404_v55  ;;  %v3216_v55 = vld [vmem:[%s4776_s6 + $0xa8] sm:$0xff] }
 0x736   : > { %v3408_v57 = vpop.eup %3407  ;;  %v2062_v33 = vadd.f32 1.0, %v3406_v56  ;;  %v2069_v32 = vmul.f32 0.5, %v2061_v27  ;;  %v3217_v56 = vld [vmem:[%s4776_s6 + $0xb0] sm:$0xff]  ;;  %v4417_v27 = vpop.f32.mrf.mxu1 }
 0x737   : > { %v3410_v63 = vpop.eup %3409  ;;  %v2058_v58 = vadd.f32 1.0, %v3408_v57  ;;  %v2068_v40 = vmul.f32 0.5, %v2060_v2  ;;  %v3218_v57 = vld [vmem:[%s4776_s6 + $0xb8] sm:$0xff] }
 0x738   : > { %v3412_v34 = vpop.eup %3411  ;;  %v2063_v37 = vadd.f32 1.0, %v3410_v63  ;;  %v2070_v3 = vmul.f32 0.5, %v2062_v33  ;;  %v4419_v33 = vpop.f32.mrf.mxu1 }
 0x739   : > { %v3414_v36 = vpop.eup %3413  ;;  %v2056_v7 = vadd.f32 1.0, %v3412_v34  ;;  %v2066_v12 = vmul.f32 0.5, %v2058_v58 }
 0x73a   : > { %v2071_v1 = vmul.f32 0.5, %v2063_v37  ;;  %v3416_v9 = vpop.eup %3415  ;;  %v4421_v63 = vpop.f32.mrf.mxu1 }
 0x73b   : > { %v3418_v45 = vpop.eup %3417  ;;  %v2078_v13 = vmul.f32 %v3416_v9, %v2070_v3  ;;  %v2064_v41 = vmul.f32 0.5, %v2056_v7  ;;  %v2111_v7 = vpop.permute.xlu1 %2110 }
 0x73c   : > { %v2079_v46 = vmul.f32 %v3414_v36, %v2071_v1  ;;  %v3420_v14 = vpop.eup %3419  ;;  %v2077_v38 = vmul.f32 %v3418_v45, %v2069_v32  ;;  %v4423_v2 = vpop.f32.mrf.mxu1 }
 0x73d   : > { %v3422_v39 = vpop.eup %3421  ;;  %v2076_v43 = vmul.f32 %v3420_v14, %v2068_v40  ;;  %v2116_v1 = vpop.permute.xlu0 %2115 }
 0x73e   : > { %2186 = vmatprep.subr.mxu1 %v2079_v46  ;;  %v3424_v30 = vpop.eup %3423  ;;  %v2075_v47 = vmul.f32 %v3422_v39, %v2067_v11  ;;  %v4425_v34 = vpop.f32.mrf.mxu1 }
 0x73f   : > { %2187 = vmatpush1.msra.mxu1 %v2078_v13  ;;  %v3426_v48 = vpop.eup %3425  ;;  %v2074_v26 = vmul.f32 %v3424_v30, %v2066_v12 }
 0x740   : > { %2188 = vmatprep.subr.mxu1 %v2077_v38  ;;  %v3428_v25 = vpop.eup %3427  ;;  %v2073_v54 = vmul.f32 %v3426_v48, %v2065_v35  ;;  %v4427_v29 = vpop.f32.mrf.mxu1 }
 0x741   : > { %2189 = vmatpush1.msra.mxu1 %v2076_v43  ;;  %v2072_v52 = vmul.f32 %v3428_v25, %v2064_v41  ;;  %v2106_v12 = vpop.permute.xlu0 %2105  ;;  %v2101_v48 = vpop.permute.xlu1 %2100 }
 0x742   : > { %2190 = vmatprep.subr.mxu1 %v2075_v47  ;;  %v4429_v37 = vpop.f32.mrf.mxu1 }
 0x743   : > { %2191 = vmatpush1.msra.mxu1 %v2074_v26 }
 0x744   : > { %2192 = vmatprep.subr.mxu1 %v2073_v54  ;;  %v4431_v58 = vpop.f32.mrf.mxu1 }
 0x745   : > { %2193 = vmatpush1.msra.mxu1 %v2072_v52 }
 0x746   : > { %3227 = vmatmul.mubr.msk.f32.vlgmr.msra.gmra.mxu1 %vm1057_vm7, %v3211_v23 }
 0x747   : > { %2232 = vmatprep.mubr.f32.mxu1 %v3527_v0 }
 0x74a   : > { %3228 = vmatmul.mubr.msk.f32.gmra.mxu1 %vm1057_vm7, %v3212_v31 }
 0x74b   : > { %2238 = vmatprep.mubr.f32.mxu1 %v3527_v0 }
 0x74e   : > { %3229 = vmatmul.mubr.msk.f32.gmra.mxu1 %vm1057_vm7, %v3213_v51 }
 0x74f   : > { %2244 = vmatprep.mubr.f32.mxu1 %v3527_v0 }
 0x752   : > { %3230 = vmatmul.mubr.msk.f32.gmra.mxu1 %vm1057_vm7, %v3214_v62  ;;  %v3249_v62 = vld [vmem:[%s4775_s5 + $0xf0] sm:$0xff] }
 0x753   : > { %2250 = vmatprep.mubr.f32.mxu1 %v3527_v0 }
 0x756   : > { %3231 = vmatmul.mubr.msk.f32.gmra.mxu1 %vm1057_vm7, %v3215_v50  ;;  %v3248_v50 = vld [vmem:[%s4775_s5 + $0xe8] sm:$0xff] }
 0x757   : > { %2256 = vmatprep.mubr.f32.mxu1 %v3527_v0 }
 0x75a   : > { %3232 = vmatmul.mubr.msk.f32.gmra.mxu1 %vm1057_vm7, %v3216_v55  ;;  %v3246_v55 = vld [vmem:[%s4775_s5 + $0xd8] sm:$0xff] }
 0x75b   : > { %2262 = vmatprep.mubr.f32.mxu1 %v3527_v0 }
 0x75e   : > { %3233 = vmatmul.mubr.msk.f32.gmra.mxu1 %vm1057_vm7, %v3217_v56  ;;  %v3247_v56 = vld [vmem:[%s4775_s5 + $0xe0] sm:$0xff] }
 0x75f   : > { %2268 = vmatprep.mubr.f32.mxu1 %v3527_v0 }
 0x762   : > { %3234 = vmatmul.mubr.msk.f32.gmra.mxu1 %vm1057_vm7, %v3218_v57  ;;  %v3245_v57 = vld [vmem:[%s4775_s5 + $0xd0] sm:$0xff] }
 0x763   : > { %2700 = vmatprep.mubr.f32.mxu1 %v3527_v0 }
 0x806   : > { %v2228_v3 = vpop.f32.mrf.mxu1 }
 0x807   : > { %v2229_v26 = vadd.f32 %v2228_v3, %v2101_v48  ;;  %v3244_v3 = vld [vmem:[%s4775_s5 + $0xc8] sm:$0xff] }
 0x808   : > { %v2230_v53 = vpop.f32.mrf.mxu1 }
 0x809   : > { %v2231_v52 = vadd.f32 %v2230_v53, %v2101_v48  ;;  %v2275_v31 = vadd.f32 %v2229_v26, %v4205_v10  ;;  %v3243_v53 = vld [vmem:[%s4775_s5 + $0xc0] sm:$0xff] }
 0x80a   : > { %v2234_v32 = vpop.f32.mrf.mxu1 }
 0x80b   : > { %v2235_v14 = vadd.f32 %v2234_v32, %v2106_v12  ;;  %v1016_v32 = vld [vmem:[%s4777_s7 + $0x38] sm:$0xff] }
 0x80c   : > { %v2236_v36 = vpop.f32.mrf.mxu1 }
 0x80d   : > { %v2237_v43 = vadd.f32 %v2236_v36, %v2106_v12  ;;  %v2277_v25 = vadd.f32 %v2235_v14, %v4196_v42  ;;  %v1015_v36 = vld [vmem:[%s4777_s7 + $0x30] sm:$0xff]  ;;  %v3167_v12 = vld [vmem:[%s4777_s7 + $0x60] sm:$0xff] }
 0x80e   : > { %v2240_v40 = vpop.f32.mrf.mxu1  ;;  %v3223_v14 = vld [vmem:[%s4777_s7 + $0xa0] sm:$0xff] }
 0x80f   : > { %v2241_v9 = vadd.f32 %v2240_v40, %v2111_v7  ;;  %v4457_v42 = vmul.f32 %v2277_v25, %v3719_v24  ;;  %v3226_v40 = vld [vmem:[%s4777_s7 + $0xb8] sm:$0xff] }
 0x810   : > { %v2242_v11 = vpop.f32.mrf.mxu1 }
 0x811   : > { %v2279_v46 = vadd.f32 %v2241_v9, %v4175_v60  ;;  %v2243_v45 = vadd.f32 %v2242_v11, %v2111_v7  ;;  %v3169_v7 = vld [vmem:[%s4777_s7 + $0x70] sm:$0xff]  ;;  %v1014_v9 = vld [vmem:[%s4777_s7 + $0x28] sm:$0xff] }
 0x812   : > { %v2246_v13 = vpop.f32.mrf.mxu1  ;;  %v3168_v11 = vld [vmem:[%s4777_s7 + $0x68] sm:$0xff] }
 0x813   : > { %v2280_v35 = vadd.f32 %v2243_v45, %v4179_v49  ;;  %v2247_v38 = vadd.f32 %v2246_v13, %v2116_v1  ;;  %v4436_v39 = vmul.f32 %v2279_v46, %v3719_v24  ;;  %v3225_v46 = vld [vmem:[%s4777_s7 + $0xb0] sm:$0xff]  ;;  %v1013_v45 = vld [vmem:[%s4777_s7 + $0x20] sm:$0xff]  ;;  %v3224_v13 = vld [vmem:[%s4777_s7 + $0xa8] sm:$0xff] }
 0x814   : > { %v2248_v41 = vpop.f32.mrf.mxu1 }
 0x815   : > { %v2281_v30 = vadd.f32 %v2247_v38, %v4185_v5  ;;  %v2249_v47 = vadd.f32 %v2248_v41, %v2116_v1  ;;  %2342 = vrot.lane.b32.xlu0 %v4436_v39, %s3535_s30  ;;  %v4441_v60 = vmul.f32 %v2280_v35, %v3721_v28  ;;  %v2278_v5 = vadd.f32 %v2237_v43, %v4201_v8  ;;  %v3170_v1 = vld [vmem:[%s4777_s7 + $0x78] sm:$0xff]  ;;  %v2735_v38 = vld [vmem:[%s4779_s9 + $0x10] sm:$0xff]  ;;  %v2734_v41 = vld [vmem:[%s4779_s9 + $0x8] sm:$0xff] }
 0x816   : > { %v4466_v8 = vmul.f32 %v2275_v31, %v3719_v24  ;;  %v2736_v35 = vld [vmem:[%s4779_s9 + $0x18] sm:$0xff]  ;;  %v2733_v43 = vld [vmem:[%s4779_s9] sm:$0xff] }
 0x817   : > { %v2282_v49 = vadd.f32 %v2249_v47, %v4191_v4  ;;  %2350 = vrot.lane.b32.xlu1 %v4441_v60, %s3535_s30  ;;  %v4447_v54 = vmul.f32 %v2281_v30, %v3719_v24  ;;  %v2276_v4 = vadd.f32 %v2231_v52, %v4209_v44  ;;  %v4462_v51 = vmul.f32 %v2278_v5, %v3721_v28  ;;  %v3250_v44 = vld [vmem:[%s4775_s5 + $0xf8] sm:$0xff]  ;;  %v2855_v30 = vld [vmem:[%s4783_s13] sm:$0x3] }
 0x818   : > { %v2774_v47 = vld [vmem:[%s4781_s11] sm:$0x3] }
 0x819   : > { %2344 = vrot.lane.b32.xlu0 %v4447_v54, %s3535_s30  ;;  %v4452_v23 = vmul.f32 %v2282_v49, %v3721_v28  ;;  %v4470_v10 = vmul.f32 %v2276_v4, %v3721_v28 }
 0x81b   : > { %2352 = vrot.lane.b32.xlu1 %v4452_v23, %s3535_s30 }
 0x81d   : > { %2340 = vrot.lane.b32.xlu0 %v4457_v42, %s3535_s30 }
 0x81f   : > { %2348 = vrot.lane.b32.xlu1 %v4462_v51, %s3535_s30 }
 0x821   : > { %2338 = vrot.lane.b32.xlu0 %v4466_v8, %s3535_s30 }
 0x823   : > { %2346 = vrot.lane.b32.xlu1 %v4470_v10, %s3535_s30 }
 0x825   : > { %2305 = vrot.lane.b32.xlu0 %v4447_v54, %s3536_s16 }
 0x827   : > { %2311 = vrot.lane.b32.xlu1 %v4441_v60, %s3536_s16 }
 0x829   : > { %2303 = vrot.lane.b32.xlu0 %v4436_v39, %s3536_s16 }
 0x82b   : > { %2313 = vrot.lane.b32.xlu1 %v4452_v23, %s3536_s16 }
 0x82d   : > { %2301 = vrot.lane.b32.xlu0 %v4457_v42, %s3536_s16 }
 0x82f   : > { %2309 = vrot.lane.b32.xlu1 %v4462_v51, %s3536_s16 }
 0x831   : > { %2299 = vrot.lane.b32.xlu0 %v4466_v8, %s3536_s16 }
 0x833   : > { %2307 = vrot.lane.b32.xlu1 %v4470_v10, %s3536_s16  ;;  %s499_s16 = sand.u32 1, %s3517_s19  }
 0x834   : > { %s3089_s20 = sshll.u32 %s499_s16, 3  ;;  %s2975_s26 = scalar_lea.sflag [#allocation3], %s499_s16 }
 0x835   : > { %2432 = vperm.xlu0 %3329, %v3250_v44   ;;  %s4717_s18 = scalar_lea.vmem [#allocation2], %s3089_s20  ;;  %s3469_s20 = sshll.u32 %s3537_s23, 4  ;;  %s3470_s20 = int_to_ptr.vmem [resolvable:$false] %s3469_s20 }
 0x836   : > { %2951 = vst [vmem:[%s4717_s18] sm:$0x33] %v3691_v6  ;;  %s2992_s27 = sshll.u32 %s4717_s18, 4  ;;  %s3471_s1 = scalar_lea.vmem %s3470_s20, 256  ;;  %s2993_s27 = int_to_ptr.vmem [resolvable:$true] %s2992_s27 }
 0x837   : > { %2427 = vperm.xlu1 %3330, %v3249_v62   ;;  %s3465_s30 = scalar_lea.vmem %s2993_s27, 128  ;;  %p3472_p0 = scmp.lt.s32.totalorder %s2993_s27, %s3470_s20 }
 0x838   : > { %p3466_p11 = scmp.ne.s32.totalorder %s2993_s27, %s3465_s30  ;;  %p3473_p1 = scmp.lt.s32.totalorder %s3471_s1, %s3465_s30 }
 0x839   : > { %2422 = vperm.xlu0 %3329, %v3248_v50  }
 0x83a   : > { %p3467_p12 = pnand %p3466_p11, %p3656_p5  ;;  %p3474_p2 = por %p3473_p1, %p3472_p0 }
 0x83b   : > { %2412 = vperm.xlu1 %3330, %v3246_v55  }
 0x83c   : > { %p3468_p13 = pneg %p3467_p12 }
 0x83d   : > { %2417 = vperm.xlu0 %3329, %v3247_v56  }
 0x83e   : > { %p3475_p3 = pnand %p3474_p2, %p3468_p13 }
 0x83f   : > { %2407 = vperm.xlu1 %3330, %v3245_v57  }
 0x841   : > { %2402 = vperm.xlu0 %3329, %v3244_v3  }
 0x843   : > { %2397 = vperm.xlu1 %3330, %v3243_v53  }
 0x845   : > { %1054 = vperm.xlu0 %3329, %v1016_v32  }
 0x847   : > { %1595 = vperm.xlu1 %3330, %v3170_v1  }
 0x849   : > { %1049 = vperm.xlu0 %3329, %v1015_v36  }
 0x84b   : > { %1590 = vperm.xlu1 %3330, %v3169_v7  }
 0x84d   : > { %2135 = vperm.xlu0 %3329, %v3226_v40  }
 0x84f   : > { %1044 = vperm.xlu1 %3330, %v1014_v9  }
 0x851   : > { %1585 = vperm.xlu0 %3329, %v3168_v11  }
 0x853   : > { %2130 = vperm.xlu1 %3330, %v3225_v46   ;;  %v3235_v46 = vld [vmem:[%s4774_s4 + $0xc0] sm:$0xff] }
 0x855   : > { %1039 = vperm.xlu0 %3329, %v1013_v45   ;;  %v3236_v45 = vld [vmem:[%s4774_s4 + $0xc8] sm:$0xff] }
 0x857   : > { %1580 = vperm.xlu1 %3330, %v3167_v12   ;;  %v3237_v12 = vld [vmem:[%s4774_s4 + $0xd0] sm:$0xff] }
 0x859   : > { %2125 = vperm.xlu0 %3329, %v3224_v13   ;;  %v3239_v13 = vld [vmem:[%s4774_s4 + $0xe0] sm:$0xff] }
 0x85b   : > { %2120 = vperm.xlu1 %3330, %v3223_v14   ;;  %v3240_v14 = vld [vmem:[%s4774_s4 + $0xe8] sm:$0xff] }
 0x85d   : > { %2754 = vperm.xlu0 %3329, %v2736_v35   ;;  %v3241_v35 = vld [vmem:[%s4774_s4 + $0xf0] sm:$0xff] }
 0x85f   : > { %2749 = vperm.xlu1 %3330, %v2735_v38   ;;  %v3242_v38 = vld [vmem:[%s4774_s4 + $0xf8] sm:$0xff] }
 0x861   : > { %2744 = vperm.xlu0 %3329, %v2734_v41  }
 0x863   : > { %2739 = vperm.xlu1 %3330, %v2733_v43  }
 0x865   : > { %2858 = vperm.xlu0 %3329, %v2855_v30  }
 0x869   : > { %2777 = vperm.xlu0 %3329, %v2774_v47  }
 0x887   : > { %v2343_v48 = vpop.permute.xlu0 %2342 }
 0x889   : > { %v2351_v26 = vpop.permute.xlu1 %2350 }
 0x88a   : > { %v2361_v4 = vsel %vm2354_vm2, %v2351_v26, %v2343_v48  ;;  %v2357_v44 = vsel %vm2354_vm2, %v2343_v48, %v2351_v26 }
 0x88b   : > { %v2345_v25 = vpop.permute.xlu0 %2344 }
 0x88d   : > { %v2353_v49 = vpop.permute.xlu1 %2352 }
 0x88e   : > { %v2358_v52 = vsel %vm2354_vm2, %v2345_v25, %v2353_v49  ;;  %v2362_v5 = vsel %vm2354_vm2, %v2353_v49, %v2345_v25 }
 0x88f   : > { %3251 = vmatprep.subr.msk.mxu0 %vm2364_vm1, %v2362_v5  ;;  %v2341_v31 = vpop.permute.xlu0 %2340 }
 0x890   : > { %2468 = vmatpush1.msra.mxu0 %v2358_v52 }
 0x891   : > { %v2349_v62 = vpop.permute.xlu1 %2348  ;;  %3252 = vmatprep.subr.msk.mxu0 %vm2364_vm1, %v2361_v4 }
 0x892   : > { %v2356_v50 = vsel %vm2354_vm2, %v2341_v31, %v2349_v62  ;;  %v2360_v55 = vsel %vm2354_vm2, %v2349_v62, %v2341_v31  ;;  %2470 = vmatpush1.msra.mxu0 %v2357_v44 }
 0x893   : > { %3253 = vmatprep.subr.msk.mxu0 %vm2364_vm1, %v2360_v55  ;;  %v2339_v56 = vpop.permute.xlu0 %2338 }
 0x894   : > { %2472 = vmatpush1.msra.mxu0 %v2356_v50 }
 0x895   : > { %v2347_v57 = vpop.permute.xlu1 %2346 }
 0x896   : > { %v2355_v3 = vsel %vm2354_vm2, %v2339_v56, %v2347_v57  ;;  %v2359_v53 = vsel %vm2354_vm2, %v2347_v57, %v2339_v56 }
 0x897   : > { %3254 = vmatprep.subr.msk.mxu0 %vm2364_vm1, %v2359_v53  ;;  %v2306_v32 = vpop.permute.xlu0 %2305 }
 0x898   : > { %2474 = vmatpush1.msra.mxu0 %v2355_v3 }
 0x899   : > { %v2312_v1 = vpop.permute.xlu1 %2311  ;;  %2475 = vmatprep.subr.mxu0 %v4452_v23 }
 0x89a   : > { %2476 = vmatpush1.msra.mxu0 %v4447_v54 }
 0x89b   : > { %2477 = vmatprep.subr.mxu0 %v4441_v60  ;;  %v2304_v36 = vpop.permute.xlu0 %2303 }
 0x89c   : > { %2478 = vmatpush1.msra.mxu0 %v4436_v39  ;;  %v2318_v23 = vsel %vm2315_vm3, %v2304_v36, %v2312_v1 }
 0x89d   : > { %v2314_v7 = vpop.permute.xlu1 %2313  ;;  %2479 = vmatprep.subr.mxu0 %v4462_v51 }
 0x89e   : > { %2480 = vmatpush1.msra.mxu0 %v4457_v42  ;;  %v2319_v60 = vsel %vm2315_vm3, %v2306_v32, %v2314_v7  ;;  %v2323_v39 = vsel %vm2315_vm3, %v2314_v7, %v2306_v32  ;;  %v2322_v42 = vsel %vm2315_vm3, %v2312_v1, %v2304_v36 }
 0x89f   : > { %2481 = vmatprep.subr.mxu0 %v4470_v10  ;;  %v2302_v61 = vpop.permute.xlu0 %2301 }
 0x8a0   : > { %2482 = vmatpush1.msra.mxu0 %v4466_v8 }
 0x8a1   : > { %v2310_v54 = vpop.permute.xlu1 %2309  ;;  %2483 = vmatprep.subr.mxu0 %v2319_v60 }
 0x8a2   : > { %3255 = vmatpush1.msk.msra.mxu0 %vm2324_vm4, %v2323_v39  ;;  %v2317_v51 = vsel %vm2315_vm3, %v2302_v61, %v2310_v54  ;;  %v2321_v8 = vsel %vm2315_vm3, %v2310_v54, %v2302_v61 }
 0x8a3   : > { %2485 = vmatprep.subr.mxu0 %v2318_v23  ;;  %v2300_v10 = vpop.permute.xlu0 %2299 }
 0x8a4   : > { %3256 = vmatpush1.msk.msra.mxu0 %vm2324_vm4, %v2322_v42 }
 0x8a5   : > { %v2308_v40 = vpop.permute.xlu1 %2307  ;;  %2487 = vmatprep.subr.mxu0 %v2317_v51 }
 0x8a6   : > { %v2320_v9 = vsel %vm2315_vm3, %v2308_v40, %v2300_v10  ;;  %3257 = vmatpush1.msk.msra.mxu0 %vm2324_vm4, %v2321_v8  ;;  %v2316_v11 = vsel %vm2315_vm3, %v2300_v10, %v2308_v40 }
 0x8a7   : > { %2489 = vmatprep.subr.mxu0 %v2316_v11 }
 0x8a8   : > { %3258 = vmatpush1.msk.msra.mxu0 %vm2324_vm4, %v2320_v9 }
 0x8a9   : > { %3259 = vmatmul.mubr.msk.f32.vlgmr.msra.gmra.mxu0 %vm815_vm6, %v3235_v46 }
 0x8aa   : > { %2529 = vmatprep.mubr.f32.mxu0 %v3527_v0 }
 0x8ad   : > { %3260 = vmatmul.mubr.msk.f32.gmra.mxu0 %vm815_vm6, %v3236_v45 }
 0x8ae   : > { %2535 = vmatprep.mubr.f32.mxu0 %v3527_v0 }
 0x8b0   : > { %v2433_v48 = vpop.permute.xlu0 %2432 }
 0x8b1   : > { %3261 = vmatmul.mubr.msk.f32.gmra.mxu0 %vm815_vm6, %v3237_v12 }
 0x8b2   : > { %2541 = vmatprep.mubr.f32.mxu0 %v3527_v0  ;;  %v2428_v55 = vpop.permute.xlu1 %2427 }
 0x8b4   : > { %v2423_v52 = vpop.permute.xlu0 %2422 }
 0x8b5   : > { %3262 = vmatmul.mubr.msk.f32.gmra.mxu0 %vm815_vm6, %v3238_v59 }
 0x8b6   : > { %2547 = vmatprep.mubr.f32.mxu0 %v3527_v0  ;;  %v2413_v60 = vpop.permute.xlu1 %2412 }
 0x8b8   : > { %v2418_v44 = vpop.permute.xlu0 %2417 }
 0x8b9   : > { %3263 = vmatmul.mubr.msk.f32.gmra.mxu0 %vm815_vm6, %v3239_v13 }
 0x8ba   : > { %2553 = vmatprep.mubr.f32.mxu0 %v3527_v0  ;;  %v2408_v45 = vpop.permute.xlu1 %2407 }
 0x8bd   : > { %3264 = vmatmul.mubr.msk.f32.gmra.mxu0 %vm815_vm6, %v3240_v14  ;;  %v2403_v14 = vpop.permute.xlu0 %2402 }
 0x8be   : > { %2559 = vmatprep.mubr.f32.mxu0 %v3527_v0 }
 0x8c1   : > { %3265 = vmatmul.mubr.msk.f32.gmra.mxu0 %vm815_vm6, %v3241_v35 }
 0x8c2   : > { %2565 = vmatprep.mubr.f32.mxu0 %v3527_v0 }
 0x8c5   : > { %3266 = vmatmul.mubr.msk.f32.gmra.mxu0 %vm815_vm6, %v3242_v38 }
 0x969   : > { %v2525_v41 = vpop.f32.mrf.mxu0 }
 0x96b   : > { %v2527_v43 = vpop.f32.mrf.mxu0 }
 0x96d   : > { %v2531_v30 = vpop.f32.mrf.mxu0 }
 0x96f   : > { %v2533_v47 = vpop.f32.mrf.mxu0 }
 0x970   : > { %v2534_v38 = vadd.f32 %v2533_v47, %v2403_v14 }
 0x971   : > { %v2537_v26 = vpop.f32.mrf.mxu0 }
 0x972   : > { %v2538_v35 = vadd.f32 %v2537_v26, %v2408_v45 }
 0x973   : > { %v2539_v25 = vpop.f32.mrf.mxu0 }
 0x974   : > { %v2540_v13 = vadd.f32 %v2539_v25, %v2408_v45 }
 0x975   : > { %v2543_v49 = vpop.f32.mrf.mxu0 }
 0x976   : > { %v2544_v59 = vadd.f32 %v2543_v49, %v2413_v60 }
 0x977   : > { %v2545_v5 = vpop.f32.mrf.mxu0 }
 0x978   : > { %v2546_v12 = vadd.f32 %v2545_v5, %v2413_v60 }
 0x979   : > { %v2549_v31 = vpop.f32.mrf.mxu0 }
 0x97a   : > { %v2550_v39 = vadd.f32 %v2549_v31, %v2418_v44  ;;  %v2532_v31 = vadd.f32 %v2531_v30, %v2403_v14 }
 0x97b   : > { %v2551_v4 = vpop.f32.mrf.mxu0 }
 0x97c   : > { %v2552_v50 = vadd.f32 %v2551_v4, %v2418_v44  ;;  %v2580_v11 = vmul.f32 0.5, %v2550_v39 }
 0x97d   : > { %v2555_v62 = vpop.f32.mrf.mxu0 }
 0x97e   : > { %v2581_v53 = vmul.f32 0.5, %v2552_v50  ;;  %v2556_v1 = vadd.f32 %v2555_v62, %v2423_v52 }
 0x97f   : > { %v2557_v56 = vpop.f32.mrf.mxu0 }
 0x980   : > { %v2558_v57 = vadd.f32 %v2557_v56, %v2423_v52  ;;  %3429 = vtanh.f32 %v2581_v53  ;;  %v2582_v8 = vmul.f32 0.5, %v2556_v1  ;;  %v2398_v52 = vpop.permute.xlu1 %2397 }
 0x981   : > { %v2561_v3 = vpop.f32.mrf.mxu0  ;;  %v2528_v4 = vadd.f32 %v2527_v43, %v2398_v52  ;;  %v2526_v44 = vadd.f32 %v2525_v41, %v2398_v52  ;;  %v2620_v52 = vld [vmem:[%s4778_s8] sm:$0xff] }
 0x982   : > { %v2562_v32 = vadd.f32 %v2561_v3, %v2428_v55  ;;  %v2583_v36 = vmul.f32 0.5, %v2558_v57 }
 0x983   : > { %v2563_v7 = vpop.f32.mrf.mxu0 }
 0x984   : > { %v2564_v61 = vadd.f32 %v2563_v7, %v2428_v55  ;;  %v2584_v54 = vmul.f32 0.5, %v2562_v32  ;;  %3431 = vtanh.f32 %v2583_v36 }
 0x985   : > { %v2567_v23 = vpop.f32.mrf.mxu0 }
 0x986   : > { %v2585_v42 = vmul.f32 0.5, %v2564_v61  ;;  %v2568_v51 = vadd.f32 %v2567_v23, %v2433_v48 }
 0x987   : > { %v2569_v10 = vpop.f32.mrf.mxu0 }
 0x988   : > { %3433 = vtanh.f32 %v2585_v42  ;;  %v2586_v40 = vmul.f32 0.5, %v2568_v51  ;;  %v2570_v9 = vadd.f32 %v2569_v10, %v2433_v48 }
 0x989   : > { %3435 = vtanh.f32 %v2584_v54 }
 0x98a   : > { %3437 = vtanh.f32 %v2586_v40  ;;  %v2587_v46 = vmul.f32 0.5, %v2570_v9 }
 0x98b   : > { %3439 = vtanh.f32 %v2582_v8 }
 0x98c   : > { %3441 = vtanh.f32 %v2587_v46 }
 0x98d   : > { %3443 = vtanh.f32 %v2580_v11  ;;  %v3430_v48 = vpop.eup %3429 }
 0x98e   : > { %3445 = vtanh.f32 %v2546_v12  ;;  %v2597_v41 = vadd.f32 1.0, %v3430_v48  ;;  %v2623_v48 = vld [vmem:[%s4778_s8 + $0x18] sm:$0xff] }
 0x98f   : > { %3447 = vtanh.f32 %v2544_v59 }
 0x990   : > { %3449 = vtanh.f32 %v2540_v13  ;;  %v2605_v10 = vmul.f32 0.5, %v2597_v41 }
 0x991   : > { %3451 = vtanh.f32 %v2538_v35  ;;  %v3432_v62 = vpop.eup %3431 }
 0x992   : > { %3453 = vtanh.f32 %v2534_v38  ;;  %v2599_v57 = vadd.f32 1.0, %v3432_v62 }
 0x993   : > { %3455 = vtanh.f32 %v2532_v31  ;;  %v2621_v31 = vld [vmem:[%s4778_s8 + $0x8] sm:$0xff] }
 0x994   : > { %3457 = vtanh.f32 %v2528_v4  ;;  %v2607_v39 = vmul.f32 0.5, %v2599_v57  ;;  %v2622_v4 = vld [vmem:[%s4778_s8 + $0x10] sm:$0xff] }
 0x995   : > { %v3434_v50 = vpop.eup %3433  ;;  %3459 = vtanh.f32 %v2526_v44  ;;  %v2252_v44 = vpop.f32.mrf.mxu1 }
 0x996   : > { %v3436_v5 = vpop.eup %3435  ;;  %v2601_v26 = vadd.f32 1.0, %v3434_v50  ;;  %v1055_v50 = vpop.permute.xlu0 %1054 }
 0x997   : > { %v3438_v49 = vpop.eup %3437  ;;  %v2600_v56 = vadd.f32 1.0, %v3436_v5  ;;  %v2254_v62 = vpop.f32.mrf.mxu1 }
 0x998   : > { %v3440_v25 = vpop.eup %3439  ;;  %v2602_v47 = vadd.f32 1.0, %v3438_v49  ;;  %v2609_v32 = vmul.f32 0.5, %v2601_v26  ;;  %v1596_v49 = vpop.permute.xlu1 %1595 }
 0x999   : > { %v3442_v55 = vpop.eup %3441  ;;  %v2598_v3 = vadd.f32 1.0, %v3440_v25  ;;  %v2608_v61 = vmul.f32 0.5, %v2600_v56  ;;  %v2258_v5 = vpop.f32.mrf.mxu1 }
 0x99a   : > { %v3444_v30 = vpop.eup %3443  ;;  %v2603_v43 = vadd.f32 1.0, %v3442_v55  ;;  %v2610_v53 = vmul.f32 0.5, %v2602_v47  ;;  %v1050_v26 = vpop.permute.xlu0 %1049 }
 0x99b   : > { %v3446_v36 = vpop.eup %3445  ;;  %v2596_v7 = vadd.f32 1.0, %v3444_v30  ;;  %v2606_v42 = vmul.f32 0.5, %v2598_v3  ;;  %v2260_v25 = vpop.f32.mrf.mxu1 }
 0x99c   : > { %v2611_v1 = vmul.f32 0.5, %v2603_v43  ;;  %v3448_v60 = vpop.eup %3447  ;;  %v1591_v47 = vpop.permute.xlu1 %1590 }
 0x99d   : > { %v3450_v23 = vpop.eup %3449  ;;  %v2618_v51 = vmul.f32 %v3448_v60, %v2610_v53  ;;  %v2604_v11 = vmul.f32 0.5, %v2596_v7  ;;  %v2264_v55 = vpop.f32.mrf.mxu1  ;;  %v1733_v60 = vadd.f32 %v4431_v58, %v1596_v49 }
 0x99e   : > { %v2619_v54 = vmul.f32 %v3446_v36, %v2611_v1  ;;  %v3452_v8 = vpop.eup %3451  ;;  %v2617_v40 = vmul.f32 %v3450_v23, %v2609_v32  ;;  %v2136_v56 = vpop.permute.xlu0 %2135 }
 0x99f   : > { %v3454_v9 = vpop.eup %3453  ;;  %v2616_v46 = vmul.f32 %v3452_v8, %v2608_v61  ;;  %v2266_v30 = vpop.f32.mrf.mxu1  ;;  %v1731_v61 = vadd.f32 %v4429_v37, %v1596_v49  ;;  %v1185_v8 = vadd.f32 %v4145_v19, %v1050_v26 }
 0x9a0   : > { %2660 = vmatprep.subr.mxu1 %v2619_v54  ;;  %v3456_v45 = vpop.eup %3455  ;;  %v2615_v12 = vmul.f32 %v3454_v9, %v2607_v39  ;;  %v1045_v57 = vpop.permute.xlu1 %1044  ;;  %v1725_v39 = vadd.f32 %v4425_v34, %v1591_v47  ;;  %v1727_v54 = vadd.f32 %v4427_v29, %v1591_v47 }
 0x9a1   : > { %2661 = vmatpush1.msra.mxu1 %v2618_v51  ;;  %v3458_v59 = vpop.eup %3457  ;;  %v2614_v13 = vmul.f32 %v3456_v45, %v2606_v42  ;;  %v2270_v43 = vpop.f32.mrf.mxu1  ;;  %v1191_v42 = vadd.f32 %v4149_v21, %v1055_v50  ;;  %v1193_v51 = vadd.f32 %v4151_v22, %v1055_v50  ;;  %v1179_v19 = vadd.f32 %v4141_v17, %v1045_v57 }
 0x9a2   : > { %2662 = vmatprep.subr.mxu1 %v2617_v40  ;;  %v3460_v14 = vpop.eup %3459  ;;  %v2613_v35 = vmul.f32 %v3458_v59, %v2605_v10  ;;  %v1586_v3 = vpop.permute.xlu0 %1585  ;;  %v1187_v10 = vadd.f32 %v4147_v20, %v1050_v26  ;;  %v2271_v40 = vadd.f32 %v2270_v43, %v2136_v56  ;;  %v1181_v20 = vadd.f32 %v4143_v18, %v1045_v57 }
 0x9a3   : > { %2663 = vmatpush1.msra.mxu1 %v2616_v46  ;;  %v2612_v38 = vmul.f32 %v3460_v14, %v2604_v11  ;;  %v2272_v41 = vpop.f32.mrf.mxu1  ;;  %v1757_v37 = vadd.f32 %v1731_v61, %v1191_v42  ;;  %v1758_v45 = vadd.f32 %v1733_v60, %v1193_v51  ;;  %v1721_v58 = vadd.f32 %v4423_v2, %v1586_v3 }
 0x9a4   : > { %2664 = vmatprep.subr.mxu1 %v2615_v12  ;;  %v2131_v53 = vpop.permute.xlu1 %2130  ;;  %v2273_v9 = vadd.f32 %v2272_v41, %v2136_v56  ;;  %v1755_v12 = vadd.f32 %v1725_v39, %v1185_v8  ;;  %v1756_v29 = vadd.f32 %v1727_v54, %v1187_v10  ;;  %v1719_v59 = vadd.f32 %v4421_v63, %v1586_v3 }
 0x9a5   : > { %2665 = vmatpush1.msra.mxu1 %v2614_v13  ;;  %v2267_v34 = vadd.f32 %v2266_v30, %v2131_v53  ;;  %v2265_v21 = vadd.f32 %v2264_v55, %v2131_v53  ;;  %v2297_v2 = vadd.f32 %v2271_v40, %v1757_v37 }
 0x9a6   : > { %2666 = vmatprep.subr.mxu1 %v2613_v35  ;;  %v1040_v32 = vpop.permute.xlu0 %1039  ;;  %v1753_v26 = vadd.f32 %v1719_v59, %v1179_v19 }
 0x9a7   : > { %2667 = vmatpush1.msra.mxu1 %v2612_v38  ;;  %v1175_v50 = vadd.f32 %v4139_v16, %v1040_v32  ;;  %v2296_v49 = vadd.f32 %v2267_v34, %v1756_v29  ;;  %v1173_v47 = vadd.f32 %v4137_v15, %v1040_v32  ;;  %v2295_v18 = vadd.f32 %v2265_v21, %v1755_v12  ;;  %v2773_v34 = vld [vmem:[%s4780_s10] sm:$0x3] }
 0x9a8   : > { %3267 = vmatmul.mubr.msk.f32.vlgmr.msra.gmra.mxu1 %vm1057_vm7, %v2620_v52  ;;  %v1581_v36 = vpop.permute.xlu1 %1580  ;;  %v2854_v12 = vld [vmem:[%s4782_s12] sm:$0x3] }
 0x9a9   : > { %2706 = vmatprep.mubr.f32.mxu1 %v3527_v0  ;;  %v1715_v14 = vadd.f32 %v4419_v33, %v1581_v36  ;;  %v1713_v38 = vadd.f32 %v4417_v27, %v1581_v36 }
 0x9aa   : > { %v2126_v11 = vpop.permute.xlu0 %2125 }
 0x9ab   : > { %v2261_v35 = vadd.f32 %v2260_v25, %v2126_v11  ;;  %v2259_v52 = vadd.f32 %v2258_v5, %v2126_v11  ;;  %v1752_v33 = vadd.f32 %v1715_v14, %v1175_v50  ;;  %v1751_v5 = vadd.f32 %v1713_v38, %v1173_v47 }
 0x9ac   : > { %3268 = vmatmul.mubr.msk.f32.gmra.mxu1 %vm1057_vm7, %v2621_v31  ;;  %v2121_v13 = vpop.permute.xlu1 %2120 }
 0x9ad   : > { %2712 = vmatprep.mubr.f32.mxu1 %v3527_v0  ;;  %v2255_v63 = vadd.f32 %v2254_v62, %v2121_v13  ;;  %v2253_v17 = vadd.f32 %v2252_v44, %v2121_v13  ;;  %v2293_v43 = vadd.f32 %v2259_v52, %v1753_v26 }
 0x9ae   : > { %v2755_v55 = vpop.permute.xlu0 %2754 }
 0x9af   : > { %v2292_v41 = vadd.f32 %v2255_v63, %v1752_v33  ;;  %v2291_v36 = vadd.f32 %v2253_v17, %v1751_v5 }
 0x9b0   : > { %3269 = vmatmul.mubr.msk.f32.gmra.mxu1 %vm1057_vm7, %v2622_v4  ;;  %v2298_v4 = vadd.f32 %v2273_v9, %v1758_v45  ;;  %v2750_v57 = vpop.permute.xlu1 %2749 }
 0x9b1   : > { %2718 = vmatprep.mubr.f32.mxu1 %v3527_v0 }
 0x9b2   : > { %v2745_v39 = vpop.permute.xlu0 %2744 }
 0x9b4   : > { %3270 = vmatmul.mubr.msk.f32.gmra.mxu1 %vm1057_vm7, %v2623_v48  ;;  %v1754_v48 = vadd.f32 %v1721_v58, %v1181_v20  ;;  %v2740_v10 = vpop.permute.xlu1 %2739 }
 0x9b5   : > { %2847 = vmatprep.mubr.f32.mxu1 %v3527_v0 }
 0x9b6   : > { %v2294_v25 = vadd.f32 %v2261_v35, %v1754_v48  ;;  %v2859_v59 = vpop.permute.xlu0 %2858 }
 0xa68   : > { %v4678_v1 = vpop.f32.mrf.mxu1 }
 0xa69   : > { %v2725_v54 = vadd.f32 %v4678_v1, %v2291_v36 }
 0xa6a   : > { %v2704_v7 = vpop.f32.mrf.mxu1 }
 0xa6b   : > { %v2726_v15 = vadd.f32 %v2704_v7, %v2292_v41 }
 0xa6c   : > { %v2708_v23 = vpop.f32.mrf.mxu1 }
 0xa6d   : > { %v2727_v61 = vadd.f32 %v2708_v23, %v2293_v43  ;;  %v2758_v11 = vadd.f32 %v2740_v10, %v2726_v15  ;;  %v2757_v23 = vadd.f32 %v2740_v10, %v2725_v54 }
 0xa6e   : > { %v2710_v46 = vpop.f32.mrf.mxu1 }
 0xa6f   : > { %v2728_v16 = vadd.f32 %v2710_v46, %v2294_v25  ;;  %v2759_v40 = vadd.f32 %v2745_v39, %v2727_v61  ;;  %v2766_v45 = vmul.f32 %v2758_v11, %v3721_v28  ;;  %v2765_v58 = vmul.f32 %v2757_v23, %v3719_v24 }
 0xa70   : > { %v2714_v22 = vpop.f32.mrf.mxu1 }
 0xa71   : > { %v2729_v3 = vadd.f32 %v2714_v22, %v2295_v18  ;;  %v2760_v51 = vadd.f32 %v2745_v39, %v2728_v16  ;;  %v2767_v1 = vmul.f32 %v2759_v40, %v3719_v24 }
 0xa72   : > { %v2716_v31 = vpop.f32.mrf.mxu1 }
 0xa73   : > { %v2730_v30 = vadd.f32 %v2716_v31, %v2296_v49  ;;  %v2761_v42 = vadd.f32 %v2750_v57, %v2729_v3  ;;  %v2768_v37 = vmul.f32 %v2760_v51, %v3721_v28  ;;  %v2778_v49 = vpop.permute.xlu0 %2777 }
 0xa74   : > { %v2720_v56 = vpop.f32.mrf.mxu1 }
 0xa75   : > { %v2731_v27 = vadd.f32 %v2720_v56, %v2297_v2  ;;  %v2762_v44 = vadd.f32 %v2750_v57, %v2730_v30  ;;  %v2769_v7 = vmul.f32 %v2761_v42, %v3719_v24  ;;  %v521_v2 = vld [vmem:[%s3685_s24] sm:$0xcc]  ;;  %s3279_s24 = sshll.u32 %s3639_s22, 7 }
 0xa76   : > { %v2722_v53 = vpop.f32.mrf.mxu1  ;;  %v2941_v48 = vrot.slane %v521_v2, 2  ;;  %s2990_s29 = scalar_lea.hbm %s4784_s14, %s3279_s24 }
 0xa77   : > { %v2732_v62 = vadd.f32 %v2722_v53, %v2298_v4  ;;  %v2763_v60 = vadd.f32 %v2755_v55, %v2731_v27  ;;  %v2770_v46 = vmul.f32 %v2762_v44, %v3721_v28  ;;  %v2940_v4 = vcombine.high %v521_v2, %v521_v2 }
 0xa79   : > { %v2764_v32 = vadd.f32 %v2755_v55, %v2732_v62  ;;  %v2771_v9 = vmul.f32 %v2763_v60, %v3719_v24  ;;  %v2942_v50 = vrot.slane %v2940_v4, 2 }
 0xa7b   : > { %v2772_v8 = vmul.f32 %v2764_v32, %v3721_v28 }
 0xa7d   : > { %2807 = vmatprep.subr.mxu1 %v2772_v8 }
 0xa7e   : > { %2808 = vmatpush1.msra.mxu1 %v2771_v9 }
 0xa7f   : > { %2809 = vmatprep.subr.mxu1 %v2770_v46 }
 0xa80   : > { %2810 = vmatpush1.msra.mxu1 %v2769_v7 }
 0xa81   : > { %2811 = vmatprep.subr.mxu1 %v2768_v37 }
 0xa82   : > { %2812 = vmatpush1.msra.mxu1 %v2767_v1 }
 0xa83   : > { %2813 = vmatprep.subr.mxu1 %v2766_v45 }
 0xa84   : > { %2814 = vmatpush1.msra.mxu1 %v2765_v58 }
 0xa85   : > { %3271 = vmatmul.mubr.msk.f32.vlgmr.msra.gmra.mxu1 %vm1057_vm7, %v2773_v34  ;;  %2888 = vmatprep.subr.mxu1 %v2772_v8 }
 0xa86   : > { %2889 = vmatpush1.msra.mxu1 %v2771_v9  ;;  %2928 = vmatprep.mubr.f32.mxu1 %v3527_v0 }
 0xa87   : > { %2890 = vmatprep.subr.mxu1 %v2770_v46 }
 0xa88   : > { %2891 = vmatpush1.msra.mxu1 %v2769_v7 }
 0xa89   : > { %2892 = vmatprep.subr.mxu1 %v2768_v37 }
 0xa8a   : > { %2893 = vmatpush1.msra.mxu1 %v2767_v1 }
 0xa8b   : > { %2894 = vmatprep.subr.mxu1 %v2766_v45 }
 0xa8c   : > { %2895 = vmatpush1.msra.mxu1 %v2765_v58 }
 0xa8d   : > { %3272 = vmatmul.mubr.msk.f32.vlgmr.msra.gmra.mxu1 %vm1057_vm7, %v2854_v12 }
 0xb45   : > { %v2849_v0 = vpop.f32.mrf.mxu1 }
 0xb46   : > { %v2850_v26 = vadd.f32 %v2849_v0, %v2778_v49 }
 0xb47   : > { %v2851_v29 = vpop.f32.mrf.mxu1 }
 0xb48   : > { %v2852_v55 = vadd.f32 %v2851_v29, %v2778_v49 }
 0xb4d   : > { %v2930_v21 = vpop.f32.mrf.mxu1 }
 0xb4e   : > { %v2931_v13 = vadd.f32 %v2930_v21, %v2859_v59 }
 0xb4f   : > { %v2932_v22 = vpop.f32.mrf.mxu1 }
 0xb50   : > { %v2935_v19 = vmul.f32 1.442695, %v2931_v13  ;;  %v2958_v20 = vmul.f32 %v2931_v13, %v3719_v24  ;;  %v2933_v14 = vadd.f32 %v2932_v22, %v2859_v59 }
 0xb52   : > { %3461 = vpow2.f32 %v2935_v19  ;;  %v2937_v35 = vmul.f32 1.442695, %v2933_v14  ;;  %v2959_v38 = vmul.f32 %v2933_v14, %v3721_v28  ;;  %v2960_v52 = vsel %vm565_vm0, %v2958_v20, 0.0 }
 0xb54   : > { %3463 = vpow2.f32 %v2937_v35  ;;  %v2961_v6 = vsel %vm565_vm0, %v2959_v38, 0.0 }
 0xb55   : > { %v2962_v31 = vadd.f32 %v2961_v6, %v2960_v52 }
 0xb57   : > { %2963 = vadd.xlane.f32.xlu1 %v2962_v31 }
 0xb5f   : > { %v3462_v63 = vpop.eup %3461 }
 0xb60   : > { %v2945_v47 = vmul.f32 %v3462_v63, %v2941_v48 }
 0xb61   : > { %v3464_v17 = vpop.eup %3463 }
 0xb62   : > { %v2946_v18 = vmul.f32 %v3464_v17, %v2942_v50  ;;  %v2947_v56 = vadd.f32 %v2945_v47, %v2850_v26 }
 0xb64   : > { %v2948_v33 = vadd.f32 %v2946_v18, %v2852_v55  ;;  %v2949_v25 = vmul.f32 %v2947_v56, %v3719_v24 }
 0xb66   : > { %v2950_v30 = vmul.f32 %v2948_v33, %v3721_v28 }
 0xb68   : > { %v2954_v27 = vcombine.low %v2949_v25, %v2950_v30 }
 0xb6a   : > { %v2955_v5 = vrot.slane %v2954_v27, 6 }
 0xb6c   : > { %2957 = vst [vmem:[%s4717_s18] sm:$0xcc] %v2955_v5 }
 0xb6d   : > { %3478 = shalt.err (!%p3475_p3)
}
 0xb6e   : > { %s3479_s22 = scalar_lea.hbm %s2990_s29, 128  ;;  %s3483_s24 = scalar_lea.hbm %s4784_s14, 256 }
 0xb6f   : > { %p3480_p4 = scmp.ne.s32.totalorder %s2990_s29, %s3479_s22  ;;  %p3484_p9 = scmp.lt.s32.totalorder %s2990_s29, %s4784_s14 }
 0xb70   : > { %p3485_p10 = scmp.lt.s32.totalorder %s3483_s24, %s3479_s22 }
 0xb71   : > { %p3481_p7 = pnand %p3480_p4, %p3656_p5 }
 0xb72   : > { %p3486_p11 = por %p3485_p10, %p3484_p9 }
 0xb73   : > { %p3482_p8 = pneg %p3481_p7 }
 0xb75   : > { %p3487_p12 = pnand %p3486_p11, %p3482_p8 }
 0xb77   : > { %3490 = shalt.err (!%p3487_p12)
}
 0xb78   : > { %3280 = dma.vmem_to_hbm [thread:$0]  (%p3656_p5), %s2993_s27, 128, %s2990_s29, %s2975_s26   ;;  %vm2972_vm5 = vcmask 0  }
 0xb79   : > { %s518_s23 = scalar_lea.vmem %s4785_s15, %s3673_s17 }
 0xbe0   : > { %v2964_v24 = vpop.xlane.xlu1 %2963 }
 0xbe1   : > { %v2965_v28 = vsel %vm565_vm0, %v2964_v24, 0.0 }
 0xbe2   : > { %v2966_v57 = vrot.slane %v2965_v28, 4 }
 0xbe4   : > { %v2967_v43 = vadd.f32 %v2966_v57, %v2965_v28 }
 0xbe6   : > { %v2968_v3 = vrot.slane %v2967_v43, 2 }
 0xbe8   : > { %v2969_v53 = vadd.f32 %v2968_v3, %v2967_v43 }
 0xbea   : > { %v2970_v41 = vrot.slane %v2969_v53, 1 }
 0xbec   : > { %v2971_v16 = vadd.f32 %v2970_v41, %v2969_v53 }
 0xbee   : > { %2973 = vst.msk [vmem:[%s518_s23] sm:$0x1] %vm2972_vm5, %v2971_v16 }
 0xbef PF: > { %s4802_s28 = sld [smem:[#allocation5_spill]]  ;;  %p3286_p5 = scmp.ge.s32.totalorder %s3525_s21, 2 }
 0xbf1   : > { %p3283_p13 = pnand %p3286_p5, %p3660_p6 }
 0xbf3   : > { %p3284_p0 = pneg %p3283_p13 }
 0xbf5   : > { %s3007_s27 = sand.u32 1, %s4802_s28  }
 0xbf6   : > { %s3008_s29 = scalar_lea.sflag [#allocation3], %s3007_s27 }
 0xbf7   : > { %3508 = dma.done.wait (%p3284_p0), %s3008_s29, 128  }
 0xbf8   : > { %3510 = vsyncadd (%p3284_p0), %s3008_s29, 4294967168  ;;  %s4804_s21 = sld [smem:[#allocation7_spill]]  ;;  %s4807_s18 = smov %s3517_s19 }
 0xbf9   : > { %s4805_s26 = sld [smem:[#allocation6_spill]] }
 0xbfa   : > { %s4806_s20 = sld [smem:[#allocation8_spill]] }
 0xbfe   : > { %p26_p1 = scmp.ge.s32.totalorder %s4804_s21, 4  }
 0xbff   : > { %s4808_s19 = smov %s4805_s26 }
 0xc00   :  { %28 = sbr.rel (!%p26_p1) target bundleno = 6 (0x6), region = 136 }
 0xc05   :  { %3019 = vsyncpa [#allocation3], 1 }
 0xc06   :  { %3021 = vsyncpa [#allocation3 + $0x1], 1 }

</bundles_post_ra>
